<compile_context>
chip_gen: v6e
topology: v6e:2x2x1
jax: 0.10.0
libtpu: 0.0.40
codegen_flags: <defaults>
</compile_context>

<pallas_src>
import functools

import jax
import jax.numpy as jnp
import numpy as np
from jax.experimental import pallas as pl
from jax.experimental.pallas import tpu as pltpu

# ---------------------------- model config ----------------------------------
BATCH = 2
SEQ = 8
INPUT_SIZE = 16
HIDDEN_SIZE = 32
NUM_LAYERS = 2
OUTPUT_SIZE = 8
DROP_PROB = 0.3        # unused at inference (identity)

GATE = 4 * HIDDEN_SIZE  # 128 lanes = exactly one vreg width
OUT_PAD = 128           # lane-dense padded logits width

# Packed parameter slab row layout (all matmul operands start 8-row aligned).
_ROW_WIH0 = 0                      # rows [0, INPUT_SIZE): W_ih0^T (g-cols x2)
_ROW_B0 = 16                       # layer-0 combined bias (g slice x2)
_ROW_B1 = 17                       # layer-1 combined bias (g slice x2)
_ROW_FCW = 24                      # rows [24, 24+H): fc_w^T zero-padded to 128 cols
_ROW_FCB = 56                      # fc bias zero-padded to 128 cols
_SLAB_ROWS = 64


# ---------------------------- fused Pallas kernel ----------------------------
def fused_rnn_kernel(x_ref, h0_ref, c0_ref, slab_ref, wbig_ref,
                     out_ref, hN_ref, cN_ref, xproj_scr,
                     *, batch, seq, input_size, hidden):
    """Whole forward (2 LSTM layers x S steps, wavefronted, + FC) in one call."""
    B, S, I, H = batch, seq, input_size, hidden
    G = 4 * H

    # Packed parameters (single DMA each for slab / W_big).
    wih0_t = slab_ref[_ROW_WIH0:_ROW_WIH0 + I, :]      # (I, 4H)
    bias0 = slab_ref[_ROW_B0:_ROW_B0 + 1, :]           # (1, 4H)
    bias1 = slab_ref[_ROW_B1:_ROW_B1 + 1, :]           # (1, 4H)
    fcw_t = slab_ref[_ROW_FCW:_ROW_FCW + H, :]         # (H, OUT_PAD)
    fcb = slab_ref[_ROW_FCB:_ROW_FCB + 1, :]           # (1, OUT_PAD)
    w_big = wbig_ref[...]                              # (2H, 8H) block matrix

    # Hoisted lane mask: lanes [2H,3H) of each 4H gate vector are the "g" gate.
    lane = jax.lax.broadcasted_iota(jnp.int32, (B, G), 1)
    g_mask = (lane >= 2 * H) & (lane < 3 * H)

    # Layer-0 input projection for the whole sequence: one MXU push, off the
    # serial recurrence.  Stored to VMEM scratch in (S, B, 4H) layout so each
    # step reads a (B,4H) slab with a plain vld (no cross-sublane extract on
    # the critical path).
    xproj = jnp.dot(x_ref[...], wih0_t, preferred_element_type=jnp.float32) + bias0
    xproj_scr[...] = jnp.transpose(xproj.reshape(B, S, G), (1, 0, 2))

    def cell_update(gates, c):
        # Single-sigmoid trick: the g-gate columns of all weights/biases were
        # pre-scaled by 2 at prep time, so tanh(z_g) == 2*sigmoid(2*z_g) - 1
        # and only ONE 128-lane transcendental sits on the chain per layer-step.
        s = jax.nn.sigmoid(gates)
        act = jnp.where(g_mask, 2.0 * s - 1.0, s)
        i_g = act[:, 0 * H:1 * H]
        f_g = act[:, 1 * H:2 * H]
        g_g = act[:, 2 * H:3 * H]
        o_g = act[:, 3 * H:4 * H]
        c_new = f_g * c + i_g * g_g
        h_new = o_g * jnp.tanh(c_new)
        return h_new, c_new

    h0 = h0_ref[0]
    c0 = c0_ref[0]
    h1 = h0_ref[1]
    c1 = c0_ref[1]

    ys1 = []
    # Wavefront: combined step k = layer-0 time k + layer-1 time k-1.
    # [h0, h1] @ W_big = [ h0 @ W_hh0^T  |  h0 @ W_ih1^T + h1 @ W_hh1^T ]
    # (layer-1's x-input is exactly the pre-update layer-0 hidden state h0),
    # i.e. both layers' serial matmuls collapse into one 256-wide MXU push.
    for k in range(S + 1):
        lhs = jnp.concatenate([h0, h1], axis=-1)                        # (B, 2H)
        gates_all = jnp.dot(lhs, w_big,
                            preferred_element_type=jnp.float32)         # (B, 8H)
        if k >= 1:                                   # layer-1, time k-1
            h1, c1 = cell_update(bias1 + gates_all[:, G:], c1)
            ys1.append(h1)
        if k < S:                                    # layer-0, time k
            h0, c0 = cell_update(xproj_scr[k] + gates_all[:, :G], c0)

    # Final states written per layer (no stack relayout).
    hN_ref[0, :, :] = h0
    hN_ref[1, :, :] = h1
    cN_ref[0, :, :] = c0
    cN_ref[1, :, :] = c1

    # Fused FC head on layer-1 outputs in batch-first row order (b*S + t);
    # OUT_PAD = 128 keeps the final store lane-dense (no masked vst).
    y = jnp.stack(ys1, axis=1).reshape(B * S, H)                        # (B*S, H)
    out_ref[...] = jnp.dot(y, fcw_t, preferred_element_type=jnp.float32) + fcb
    # TODO(synk): training-mode dropout (between LSTM layers and after the LSTM)
    # is not implemented; eval-mode identity semantics are used.


# ---------------------------- one-time parameter prep -------------------------
def prepare_params(params):
    """Host-side, one-time: transposes, bias fusion, g-gate 2x pre-scale (for
    the single-sigmoid tanh identity), block-diagonal W_big and lane-dense slab
    packing.  Removes all per-call XLA prep ops from the forward path."""
    H, I, O, G = HIDDEN_SIZE, INPUT_SIZE, OUTPUT_SIZE, GATE
    assert NUM_LAYERS == 2 and G == 128 and I <= 16 and O <= OUT_PAD

    def scale_g(w):  # scale the g-gate block (tanh -> single-sigmoid identity)
        w = np.array(w, dtype=np.float32, copy=True)
        w[..., 2 * H:3 * H] *= 2.0
        return w

    w_ih0, w_hh0, b_ih0, b_hh0 = [np.asarray(a, np.float32) for a in params["lstm"][0]]
    w_ih1, w_hh1, b_ih1, b_hh1 = [np.asarray(a, np.float32) for a in params["lstm"][1]]

    slab = np.zeros((_SLAB_ROWS, G), np.float32)
    slab[_ROW_WIH0:_ROW_WIH0 + I, :] = scale_g(w_ih0.T)          # (I, 4H)
    slab[_ROW_B0, :] = scale_g(b_ih0 + b_hh0)
    slab[_ROW_B1, :] = scale_g(b_ih1 + b_hh1)
    slab[_ROW_FCW:_ROW_FCW + H, :O] = np.asarray(params["fc_w"], np.float32).T
    slab[_ROW_FCB, :O] = np.asarray(params["fc_b"], np.float32)

    # Block matrix for the fused per-step recurrent matmul.
    w_big = np.zeros((2 * H, 2 * G), np.float32)
    w_big[:H, :G] = scale_g(w_hh0.T)      # layer-0 recurrent
    w_big[:H, G:] = scale_g(w_ih1.T)      # layer-1 input (from layer-0 h)
    w_big[H:, G:] = scale_g(w_hh1.T)      # layer-1 recurrent

    return {"slab": jnp.asarray(slab), "w_big": jnp.asarray(w_big)}


# ---------------------------- wrapper -----------------------------------------
def rnn_model_forward(prepped, x, hidden_state):
    """Matches RNNModel.forward: returns (logits (B*S, O), (h_n, c_n))."""
    h0, c0 = hidden_state                 # (L, B, H) each
    B, S, I = x.shape
    H, L = HIDDEN_SIZE, NUM_LAYERS

    kernel = functools.partial(fused_rnn_kernel, batch=B, seq=S,
                               input_size=I, hidden=H)
    vmem = pl.BlockSpec(memory_space=pltpu.MemorySpace.VMEM)
    out_pad, h_n, c_n = pl.pallas_call(
        kernel,
        out_shape=(jax.ShapeDtypeStruct((B * S, OUT_PAD), jnp.float32),
                   jax.ShapeDtypeStruct((L, B, H), jnp.float32),
                   jax.ShapeDtypeStruct((L, B, H), jnp.float32)),
        in_specs=[vmem] * 5,
        out_specs=(vmem, vmem, vmem),
        scratch_shapes=[pltpu.VMEM((S, B, 4 * H), jnp.float32)],
    )(x.reshape(B * S, I), h0, c0, prepped["slab"], prepped["w_big"])
    return out_pad[:, :OUTPUT_SIZE], (h_n, c_n)


# ---------------------------- pure-JAX reference ------------------------------
def lstm_cell_ref(h, c, x_t, w_ih, w_hh, b):
    gates = x_t @ w_ih.T + h @ w_hh.T + b
    i, f, g, o = jnp.split(gates, 4, axis=-1)
    i, f, o = jax.nn.sigmoid(i), jax.nn.sigmoid(f), jax.nn.sigmoid(o)
    g = jnp.tanh(g)
    c_new = f * c + i * g
    h_new = o * jnp.tanh(c_new)
    return h_new, c_new


def rnn_model_ref(params, x, hidden_state):
    h0, c0 = hidden_state
    x_seq = jnp.transpose(x, (1, 0, 2))    # (S, B, I)
    h_finals, c_finals = [], []
    layer_in = x_seq
    for l in range(NUM_LAYERS):
        w_ih, w_hh, b_ih, b_hh = params["lstm"][l]
        b = b_ih + b_hh

        def step(carry, x_t, w_ih=w_ih, w_hh=w_hh, b=b):
            h, c = carry
            h, c = lstm_cell_ref(h, c, x_t, w_ih, w_hh, b)
            return (h, c), h

        (hN, cN), ys = jax.lax.scan(step, (h0[l], c0[l]), layer_in)
        layer_in = ys
        h_finals.append(hN)
        c_finals.append(cN)
    out = jnp.transpose(layer_in, (1, 0, 2)).reshape(-1, HIDDEN_SIZE)
    logits = out @ params["fc_w"].T + params["fc_b"]
    return logits, (jnp.stack(h_finals), jnp.stack(c_finals))


# ---------------------------- parameter init ----------------------------------
def init_params(key):
    params = {"lstm": []}
    k_lstm = 1.0 / np.sqrt(HIDDEN_SIZE)
    for l in range(NUM_LAYERS):
        in_dim = INPUT_SIZE if l == 0 else HIDDEN_SIZE
        key, k1, k2, k3, k4 = jax.random.split(key, 5)
        w_ih = jax.random.uniform(k1, (4 * HIDDEN_SIZE, in_dim),
                                  minval=-k_lstm, maxval=k_lstm, dtype=jnp.float32)
        w_hh = jax.random.uniform(k2, (4 * HIDDEN_SIZE, HIDDEN_SIZE),
                                  minval=-k_lstm, maxval=k_lstm, dtype=jnp.float32)
        b_ih = jax.random.uniform(k3, (4 * HIDDEN_SIZE,),
                                  minval=-k_lstm, maxval=k_lstm, dtype=jnp.float32)
        b_hh = jax.random.uniform(k4, (4 * HIDDEN_SIZE,),
                                  minval=-k_lstm, maxval=k_lstm, dtype=jnp.float32)
        params["lstm"].append((w_ih, w_hh, b_ih, b_hh))
    key, k5, k6 = jax.random.split(key, 3)
    k_fc = 1.0 / np.sqrt(HIDDEN_SIZE)
    params["fc_w"] = jax.random.uniform(k5, (OUTPUT_SIZE, HIDDEN_SIZE),
                                        minval=-k_fc, maxval=k_fc, dtype=jnp.float32)
    params["fc_b"] = jax.random.uniform(k6, (OUTPUT_SIZE,),
                                        minval=-k_fc, maxval=k_fc, dtype=jnp.float32)
    return params, key


# ---------------------------- main --------------------------------------------
if __name__ == "__main__":
    key = jax.random.PRNGKey(0)
    params, key = init_params(key)
    prepped = prepare_params(params)       # one-time; off the per-call path

    key, kx = jax.random.split(key)
    x = jax.random.normal(kx, (BATCH, SEQ, INPUT_SIZE), dtype=jnp.float32)
    # init_hidden(batch_size): zeros
    h0 = jnp.zeros((NUM_LAYERS, BATCH, HIDDEN_SIZE), dtype=jnp.float32)
    c0 = jnp.zeros((NUM_LAYERS, BATCH, HIDDEN_SIZE), dtype=jnp.float32)

    fwd = jax.jit(rnn_model_forward)
    logits, (h_n, c_n) = fwd(prepped, x, (h0, c0))
    jax.block_until_ready((logits, h_n, c_n))

    ref_logits, (ref_h, ref_c) = rnn_model_ref(params, x, (h0, c0))
    np.testing.assert_allclose(np.asarray(logits), np.asarray(ref_logits),
                               rtol=1e-4, atol=2e-5)
    np.testing.assert_allclose(np.asarray(h_n), np.asarray(ref_h),
                               rtol=1e-4, atol=2e-5)
    np.testing.assert_allclose(np.asarray(c_n), np.asarray(ref_c),
                               rtol=1e-4, atol=2e-5)

    assert logits.shape == (BATCH * SEQ, OUTPUT_SIZE)
    assert h_n.shape == (NUM_LAYERS, BATCH, HIDDEN_SIZE)
    assert c_n.shape == (NUM_LAYERS, BATCH, HIDDEN_SIZE)
    print("KERNEL_OK")
</pallas_src>

<mosaic_0001>
module attributes {stable_mosaic.version = 11 : i64} {
  func.func @fused_rnn_kernel(%arg0: memref<16x16xf32, #tpu.memory_space<vmem>>, %arg1: memref<2x2x32xf32, #tpu.memory_space<vmem>>, %arg2: memref<2x2x32xf32, #tpu.memory_space<vmem>>, %arg3: memref<64x128xf32, #tpu.memory_space<vmem>>, %arg4: memref<64x256xf32, #tpu.memory_space<vmem>>, %arg5: memref<16x128xf32, #tpu.memory_space<vmem>>, %arg6: memref<2x2x32xf32, #tpu.memory_space<vmem>>, %arg7: memref<2x2x32xf32, #tpu.memory_space<vmem>>, %arg8: memref<8x2x128xf32, #tpu.memory_space<vmem>>) attributes {dimension_semantics = [], scalar_prefetch = 0 : i64, scratch_operands = 1 : i64, tpu.core_type = #tpu.core_type<tc>} {
    %c0 = arith.constant 0 : index
    %c0_0 = arith.constant 0 : index
    %0 = vector.load %arg3[%c0, %c0_0] : memref<64x128xf32, #tpu.memory_space<vmem>>, vector<16x128xf32>
    %c16 = arith.constant 16 : index
    %c0_1 = arith.constant 0 : index
    %1 = vector.load %arg3[%c16, %c0_1] : memref<64x128xf32, #tpu.memory_space<vmem>>, vector<1x128xf32>
    %c17 = arith.constant 17 : index
    %c0_2 = arith.constant 0 : index
    %2 = vector.load %arg3[%c17, %c0_2] : memref<64x128xf32, #tpu.memory_space<vmem>>, vector<1x128xf32>
    %c24 = arith.constant 24 : index
    %c0_3 = arith.constant 0 : index
    %3 = vector.load %arg3[%c24, %c0_3] : memref<64x128xf32, #tpu.memory_space<vmem>>, vector<32x128xf32>
    %c56 = arith.constant 56 : index
    %c0_4 = arith.constant 0 : index
    %4 = vector.load %arg3[%c56, %c0_4] : memref<64x128xf32, #tpu.memory_space<vmem>>, vector<1x128xf32>
    %c0_5 = arith.constant 0 : index
    %c0_6 = arith.constant 0 : index
    %5 = vector.load %arg4[%c0_5, %c0_6] : memref<64x256xf32, #tpu.memory_space<vmem>>, vector<64x256xf32>
    %6 = tpu.iota {dimensions = array<i32: 1>} : vector<2x128xi32>
    %c64_i32 = arith.constant 64 : i32
    %7 = vector.broadcast %c64_i32 : i32 to vector<2x128xi32>
    %8 = arith.cmpi sge, %6, %7 : vector<2x128xi32>
    %c96_i32 = arith.constant 96 : i32
    %9 = vector.broadcast %c96_i32 : i32 to vector<2x128xi32>
    %10 = arith.cmpi slt, %6, %9 : vector<2x128xi32>
    %11 = arith.andi %8, %10 : vector<2x128xi1>
    %c0_7 = arith.constant 0 : index
    %c0_8 = arith.constant 0 : index
    %12 = vector.load %arg0[%c0_7, %c0_8] : memref<16x16xf32, #tpu.memory_space<vmem>>, vector<16x16xf32>
    %cst = arith.constant dense<0.000000e+00> : vector<16x128xf32>
    %13 = tpu.matmul %12, %0, %cst {dimension_numbers = #tpu.dot_dimension_numbers<[1], [0], [0], [1], [0, 0, 1, 1], [], []>} : vector<16x16xf32>, vector<16x128xf32>, vector<16x128xf32> -> vector<16x128xf32>
    %14 = vector.broadcast %1 : vector<1x128xf32> to vector<16x128xf32>
    %15 = arith.addf %13, %14 : vector<16x128xf32>
    %16 = vector.shape_cast %15 : vector<16x128xf32> to vector<2x8x128xf32>
    %17 = tpu.transpose %16, [1, 0, 2] : vector<2x8x128xf32> -> vector<8x2x128xf32>
    %c0_9 = arith.constant 0 : index
    %c0_10 = arith.constant 0 : index
    %c0_11 = arith.constant 0 : index
    %18 = vector.load %arg8[%c0_9, %c0_10, %c0_11] : memref<8x2x128xf32, #tpu.memory_space<vmem>>, vector<8x2x128xf32>
    tpu.vector_store %arg8[%c0_9, %c0_10, %c0_11], %17 {strides = array<i32>} : memref<8x2x128xf32, #tpu.memory_space<vmem>>, vector<8x2x128xf32>,
    %c0_12 = arith.constant 0 : index
    %c0_13 = arith.constant 0 : index
    %c0_14 = arith.constant 0 : index
    %19 = vector.load %arg1[%c0_12, %c0_13, %c0_14] : memref<2x2x32xf32, #tpu.memory_space<vmem>>, vector<1x2x32xf32>
    %20 = vector.shape_cast %19 : vector<1x2x32xf32> to vector<2x32xf32>
    %c0_15 = arith.constant 0 : index
    %c0_16 = arith.constant 0 : index
    %c0_17 = arith.constant 0 : index
    %21 = vector.load %arg2[%c0_15, %c0_16, %c0_17] : memref<2x2x32xf32, #tpu.memory_space<vmem>>, vector<1x2x32xf32>
    %22 = vector.shape_cast %21 : vector<1x2x32xf32> to vector<2x32xf32>
    %c1 = arith.constant 1 : index
    %c0_18 = arith.constant 0 : index
    %c0_19 = arith.constant 0 : index
    %23 = vector.load %arg1[%c1, %c0_18, %c0_19] : memref<2x2x32xf32, #tpu.memory_space<vmem>>, vector<1x2x32xf32>
    %24 = vector.shape_cast %23 : vector<1x2x32xf32> to vector<2x32xf32>
    %c1_20 = arith.constant 1 : index
    %c0_21 = arith.constant 0 : index
    %c0_22 = arith.constant 0 : index
    %25 = vector.load %arg2[%c1_20, %c0_21, %c0_22] : memref<2x2x32xf32, #tpu.memory_space<vmem>>, vector<1x2x32xf32>
    %26 = vector.shape_cast %25 : vector<1x2x32xf32> to vector<2x32xf32>
    %27 = tpu.concatenate %20, %24 in 1 : vector<2x32xf32>, vector<2x32xf32> -> vector<2x64xf32>
    %cst_23 = arith.constant dense<0.000000e+00> : vector<2x256xf32>
    %28 = tpu.matmul %27, %5, %cst_23 {dimension_numbers = #tpu.dot_dimension_numbers<[1], [0], [0], [1], [0, 0, 1, 1], [], []>} : vector<2x64xf32>, vector<64x256xf32>, vector<2x256xf32> -> vector<2x256xf32>
    %c0_24 = arith.constant 0 : index
    %c0_25 = arith.constant 0 : index
    %c0_26 = arith.constant 0 : index
    %29 = vector.load %arg8[%c0_24, %c0_25, %c0_26] : memref<8x2x128xf32, #tpu.memory_space<vmem>>, vector<1x2x128xf32>
    %30 = vector.shape_cast %29 : vector<1x2x128xf32> to vector<2x128xf32>
    %31 = vector.extract_strided_slice %28 {offsets = [0, 0], sizes = [2, 128], strides = [1, 1]} : vector<2x256xf32> to vector<2x128xf32>
    %32 = arith.addf %30, %31 : vector<2x128xf32>
    %33 = arith.negf %32 : vector<2x128xf32>
    %34 = math.exp %33 : vector<2x128xf32>
    %cst_27 = arith.constant 1.000000e+00 : f32
    %35 = vector.broadcast %cst_27 : f32 to vector<2x128xf32>
    %36 = arith.addf %35, %34 : vector<2x128xf32>
    %37 = arith.divf %35, %36 : vector<2x128xf32>
    %cst_28 = arith.constant 2.000000e+00 : f32
    %38 = vector.broadcast %cst_28 : f32 to vector<2x128xf32>
    %39 = arith.mulf %38, %37 : vector<2x128xf32>
    %cst_29 = arith.constant 1.000000e+00 : f32
    %40 = vector.broadcast %cst_29 : f32 to vector<2x128xf32>
    %41 = arith.subf %39, %40 : vector<2x128xf32>
    %42 = arith.select %11, %41, %37 : vector<2x128xi1>, vector<2x128xf32>
    %43 = vector.extract_strided_slice %42 {offsets = [0, 0], sizes = [2, 32], strides = [1, 1]} : vector<2x128xf32> to vector<2x32xf32>
    %44 = vector.extract_strided_slice %42 {offsets = [0, 32], sizes = [2, 32], strides = [1, 1]} : vector<2x128xf32> to vector<2x32xf32>
    %45 = vector.extract_strided_slice %42 {offsets = [0, 64], sizes = [2, 32], strides = [1, 1]} : vector<2x128xf32> to vector<2x32xf32>
    %46 = vector.extract_strided_slice %42 {offsets = [0, 96], sizes = [2, 32], strides = [1, 1]} : vector<2x128xf32> to vector<2x32xf32>
    %47 = arith.mulf %44, %22 : vector<2x32xf32>
    %48 = arith.mulf %43, %45 : vector<2x32xf32>
    %49 = arith.addf %47, %48 : vector<2x32xf32>
    %50 = math.tanh %49 : vector<2x32xf32>
    %51 = arith.mulf %46, %50 : vector<2x32xf32>
    %52 = tpu.concatenate %51, %24 in 1 : vector<2x32xf32>, vector<2x32xf32> -> vector<2x64xf32>
    %cst_30 = arith.constant dense<0.000000e+00> : vector<2x256xf32>
    %53 = tpu.matmul %52, %5, %cst_30 {dimension_numbers = #tpu.dot_dimension_numbers<[1], [0], [0], [1], [0, 0, 1, 1], [], []>} : vector<2x64xf32>, vector<64x256xf32>, vector<2x256xf32> -> vector<2x256xf32>
    %54 = vector.extract_strided_slice %53 {offsets = [0, 128], sizes = [2, 128], strides = [1, 1]} : vector<2x256xf32> to vector<2x128xf32>
    %55 = vector.broadcast %2 : vector<1x128xf32> to vector<2x128xf32>
    %56 = arith.addf %55, %54 : vector<2x128xf32>
    %57 = arith.negf %56 : vector<2x128xf32>
    %58 = math.exp %57 : vector<2x128xf32>
    %cst_31 = arith.constant 1.000000e+00 : f32
    %59 = vector.broadcast %cst_31 : f32 to vector<2x128xf32>
    %60 = arith.addf %59, %58 : vector<2x128xf32>
    %61 = arith.divf %59, %60 : vector<2x128xf32>
    %cst_32 = arith.constant 2.000000e+00 : f32
    %62 = vector.broadcast %cst_32 : f32 to vector<2x128xf32>
    %63 = arith.mulf %62, %61 : vector<2x128xf32>
    %cst_33 = arith.constant 1.000000e+00 : f32
    %64 = vector.broadcast %cst_33 : f32 to vector<2x128xf32>
    %65 = arith.subf %63, %64 : vector<2x128xf32>
    %66 = arith.select %11, %65, %61 : vector<2x128xi1>, vector<2x128xf32>
    %67 = vector.extract_strided_slice %66 {offsets = [0, 0], sizes = [2, 32], strides = [1, 1]} : vector<2x128xf32> to vector<2x32xf32>
    %68 = vector.extract_strided_slice %66 {offsets = [0, 32], sizes = [2, 32], strides = [1, 1]} : vector<2x128xf32> to vector<2x32xf32>
    %69 = vector.extract_strided_slice %66 {offsets = [0, 64], sizes = [2, 32], strides = [1, 1]} : vector<2x128xf32> to vector<2x32xf32>
    %70 = vector.extract_strided_slice %66 {offsets = [0, 96], sizes = [2, 32], strides = [1, 1]} : vector<2x128xf32> to vector<2x32xf32>
    %71 = arith.mulf %68, %26 : vector<2x32xf32>
    %72 = arith.mulf %67, %69 : vector<2x32xf32>
    %73 = arith.addf %71, %72 : vector<2x32xf32>
    %74 = math.tanh %73 : vector<2x32xf32>
    %75 = arith.mulf %70, %74 : vector<2x32xf32>
    %c1_34 = arith.constant 1 : index
    %c0_35 = arith.constant 0 : index
    %c0_36 = arith.constant 0 : index
    %76 = vector.load %arg8[%c1_34, %c0_35, %c0_36] : memref<8x2x128xf32, #tpu.memory_space<vmem>>, vector<1x2x128xf32>
    %77 = vector.shape_cast %76 : vector<1x2x128xf32> to vector<2x128xf32>
    %78 = vector.extract_strided_slice %53 {offsets = [0, 0], sizes = [2, 128], strides = [1, 1]} : vector<2x256xf32> to vector<2x128xf32>
    %79 = arith.addf %77, %78 : vector<2x128xf32>
    %80 = arith.negf %79 : vector<2x128xf32>
    %81 = math.exp %80 : vector<2x128xf32>
    %cst_37 = arith.constant 1.000000e+00 : f32
    %82 = vector.broadcast %cst_37 : f32 to vector<2x128xf32>
    %83 = arith.addf %82, %81 : vector<2x128xf32>
    %84 = arith.divf %82, %83 : vector<2x128xf32>
    %cst_38 = arith.constant 2.000000e+00 : f32
    %85 = vector.broadcast %cst_38 : f32 to vector<2x128xf32>
    %86 = arith.mulf %85, %84 : vector<2x128xf32>
    %cst_39 = arith.constant 1.000000e+00 : f32
    %87 = vector.broadcast %cst_39 : f32 to vector<2x128xf32>
    %88 = arith.subf %86, %87 : vector<2x128xf32>
    %89 = arith.select %11, %88, %84 : vector<2x128xi1>, vector<2x128xf32>
    %90 = vector.extract_strided_slice %89 {offsets = [0, 0], sizes = [2, 32], strides = [1, 1]} : vector<2x128xf32> to vector<2x32xf32>
    %91 = vector.extract_strided_slice %89 {offsets = [0, 32], sizes = [2, 32], strides = [1, 1]} : vector<2x128xf32> to vector<2x32xf32>
    %92 = vector.extract_strided_slice %89 {offsets = [0, 64], sizes = [2, 32], strides = [1, 1]} : vector<2x128xf32> to vector<2x32xf32>
    %93 = vector.extract_strided_slice %89 {offsets = [0, 96], sizes = [2, 32], strides = [1, 1]} : vector<2x128xf32> to vector<2x32xf32>
    %94 = arith.mulf %91, %49 : vector<2x32xf32>
    %95 = arith.mulf %90, %92 : vector<2x32xf32>
    %96 = arith.addf %94, %95 : vector<2x32xf32>
    %97 = math.tanh %96 : vector<2x32xf32>
    %98 = arith.mulf %93, %97 : vector<2x32xf32>
    %99 = tpu.concatenate %98, %75 in 1 : vector<2x32xf32>, vector<2x32xf32> -> vector<2x64xf32>
    %cst_40 = arith.constant dense<0.000000e+00> : vector<2x256xf32>
    %100 = tpu.matmul %99, %5, %cst_40 {dimension_numbers = #tpu.dot_dimension_numbers<[1], [0], [0], [1], [0, 0, 1, 1], [], []>} : vector<2x64xf32>, vector<64x256xf32>, vector<2x256xf32> -> vector<2x256xf32>
    %101 = vector.extract_strided_slice %100 {offsets = [0, 128], sizes = [2, 128], strides = [1, 1]} : vector<2x256xf32> to vector<2x128xf32>
    %102 = vector.broadcast %2 : vector<1x128xf32> to vector<2x128xf32>
    %103 = arith.addf %102, %101 : vector<2x128xf32>
    %104 = arith.negf %103 : vector<2x128xf32>
    %105 = math.exp %104 : vector<2x128xf32>
    %cst_41 = arith.constant 1.000000e+00 : f32
    %106 = vector.broadcast %cst_41 : f32 to vector<2x128xf32>
    %107 = arith.addf %106, %105 : vector<2x128xf32>
    %108 = arith.divf %106, %107 : vector<2x128xf32>
    %cst_42 = arith.constant 2.000000e+00 : f32
    %109 = vector.broadcast %cst_42 : f32 to vector<2x128xf32>
    %110 = arith.mulf %109, %108 : vector<2x128xf32>
    %cst_43 = arith.constant 1.000000e+00 : f32
    %111 = vector.broadcast %cst_43 : f32 to vector<2x128xf32>
    %112 = arith.subf %110, %111 : vector<2x128xf32>
    %113 = arith.select %11, %112, %108 : vector<2x128xi1>, vector<2x128xf32>
    %114 = vector.extract_strided_slice %113 {offsets = [0, 0], sizes = [2, 32], strides = [1, 1]} : vector<2x128xf32> to vector<2x32xf32>
    %115 = vector.extract_strided_slice %113 {offsets = [0, 32], sizes = [2, 32], strides = [1, 1]} : vector<2x128xf32> to vector<2x32xf32>
    %116 = vector.extract_strided_slice %113 {offsets = [0, 64], sizes = [2, 32], strides = [1, 1]} : vector<2x128xf32> to vector<2x32xf32>
    %117 = vector.extract_strided_slice %113 {offsets = [0, 96], sizes = [2, 32], strides = [1, 1]} : vector<2x128xf32> to vector<2x32xf32>
    %118 = arith.mulf %115, %73 : vector<2x32xf32>
    %119 = arith.mulf %114, %116 : vector<2x32xf32>
    %120 = arith.addf %118, %119 : vector<2x32xf32>
    %121 = math.tanh %120 : vector<2x32xf32>
    %122 = arith.mulf %117, %121 : vector<2x32xf32>
    %c2 = arith.constant 2 : index
    %c0_44 = arith.constant 0 : index
    %c0_45 = arith.constant 0 : index
    %123 = vector.load %arg8[%c2, %c0_44, %c0_45] : memref<8x2x128xf32, #tpu.memory_space<vmem>>, vector<1x2x128xf32>
    %124 = vector.shape_cast %123 : vector<1x2x128xf32> to vector<2x128xf32>
    %125 = vector.extract_strided_slice %100 {offsets = [0, 0], sizes = [2, 128], strides = [1, 1]} : vector<2x256xf32> to vector<2x128xf32>
    %126 = arith.addf %124, %125 : vector<2x128xf32>
    %127 = arith.negf %126 : vector<2x128xf32>
    %128 = math.exp %127 : vector<2x128xf32>
    %cst_46 = arith.constant 1.000000e+00 : f32
    %129 = vector.broadcast %cst_46 : f32 to vector<2x128xf32>
    %130 = arith.addf %129, %128 : vector<2x128xf32>
    %131 = arith.divf %129, %130 : vector<2x128xf32>
    %cst_47 = arith.constant 2.000000e+00 : f32
    %132 = vector.broadcast %cst_47 : f32 to vector<2x128xf32>
    %133 = arith.mulf %132, %131 : vector<2x128xf32>
    %cst_48 = arith.constant 1.000000e+00 : f32
    %134 = vector.broadcast %cst_48 : f32 to vector<2x128xf32>
    %135 = arith.subf %133, %134 : vector<2x128xf32>
    %136 = arith.select %11, %135, %131 : vector<2x128xi1>, vector<2x128xf32>
    %137 = vector.extract_strided_slice %136 {offsets = [0, 0], sizes = [2, 32], strides = [1, 1]} : vector<2x128xf32> to vector<2x32xf32>
    %138 = vector.extract_strided_slice %136 {offsets = [0, 32], sizes = [2, 32], strides = [1, 1]} : vector<2x128xf32> to vector<2x32xf32>
    %139 = vector.extract_strided_slice %136 {offsets = [0, 64], sizes = [2, 32], strides = [1, 1]} : vector<2x128xf32> to vector<2x32xf32>
    %140 = vector.extract_strided_slice %136 {offsets = [0, 96], sizes = [2, 32], strides = [1, 1]} : vector<2x128xf32> to vector<2x32xf32>
    %141 = arith.mulf %138, %96 : vector<2x32xf32>
    %142 = arith.mulf %137, %139 : vector<2x32xf32>
    %143 = arith.addf %141, %142 : vector<2x32xf32>
    %144 = math.tanh %143 : vector<2x32xf32>
    %145 = arith.mulf %140, %144 : vector<2x32xf32>
    %146 = tpu.concatenate %145, %122 in 1 : vector<2x32xf32>, vector<2x32xf32> -> vector<2x64xf32>
    %cst_49 = arith.constant dense<0.000000e+00> : vector<2x256xf32>
    %147 = tpu.matmul %146, %5, %cst_49 {dimension_numbers = #tpu.dot_dimension_numbers<[1], [0], [0], [1], [0, 0, 1, 1], [], []>} : vector<2x64xf32>, vector<64x256xf32>, vector<2x256xf32> -> vector<2x256xf32>
    %148 = vector.extract_strided_slice %147 {offsets = [0, 128], sizes = [2, 128], strides = [1, 1]} : vector<2x256xf32> to vector<2x128xf32>
    %149 = vector.broadcast %2 : vector<1x128xf32> to vector<2x128xf32>
    %150 = arith.addf %149, %148 : vector<2x128xf32>
    %151 = arith.negf %150 : vector<2x128xf32>
    %152 = math.exp %151 : vector<2x128xf32>
    %cst_50 = arith.constant 1.000000e+00 : f32
    %153 = vector.broadcast %cst_50 : f32 to vector<2x128xf32>
    %154 = arith.addf %153, %152 : vector<2x128xf32>
    %155 = arith.divf %153, %154 : vector<2x128xf32>
    %cst_51 = arith.constant 2.000000e+00 : f32
    %156 = vector.broadcast %cst_51 : f32 to vector<2x128xf32>
    %157 = arith.mulf %156, %155 : vector<2x128xf32>
    %cst_52 = arith.constant 1.000000e+00 : f32
    %158 = vector.broadcast %cst_52 : f32 to vector<2x128xf32>
    %159 = arith.subf %157, %158 : vector<2x128xf32>
    %160 = arith.select %11, %159, %155 : vector<2x128xi1>, vector<2x128xf32>
    %161 = vector.extract_strided_slice %160 {offsets = [0, 0], sizes = [2, 32], strides = [1, 1]} : vector<2x128xf32> to vector<2x32xf32>
    %162 = vector.extract_strided_slice %160 {offsets = [0, 32], sizes = [2, 32], strides = [1, 1]} : vector<2x128xf32> to vector<2x32xf32>
    %163 = vector.extract_strided_slice %160 {offsets = [0, 64], sizes = [2, 32], strides = [1, 1]} : vector<2x128xf32> to vector<2x32xf32>
    %164 = vector.extract_strided_slice %160 {offsets = [0, 96], sizes = [2, 32], strides = [1, 1]} : vector<2x128xf32> to vector<2x32xf32>
    %165 = arith.mulf %162, %120 : vector<2x32xf32>
    %166 = arith.mulf %161, %163 : vector<2x32xf32>
    %167 = arith.addf %165, %166 : vector<2x32xf32>
    %168 = math.tanh %167 : vector<2x32xf32>
    %169 = arith.mulf %164, %168 : vector<2x32xf32>
    %c3 = arith.constant 3 : index
    %c0_53 = arith.constant 0 : index
    %c0_54 = arith.constant 0 : index
    %170 = vector.load %arg8[%c3, %c0_53, %c0_54] : memref<8x2x128xf32, #tpu.memory_space<vmem>>, vector<1x2x128xf32>
    %171 = vector.shape_cast %170 : vector<1x2x128xf32> to vector<2x128xf32>
    %172 = vector.extract_strided_slice %147 {offsets = [0, 0], sizes = [2, 128], strides = [1, 1]} : vector<2x256xf32> to vector<2x128xf32>
    %173 = arith.addf %171, %172 : vector<2x128xf32>
    %174 = arith.negf %173 : vector<2x128xf32>
    %175 = math.exp %174 : vector<2x128xf32>
    %cst_55 = arith.constant 1.000000e+00 : f32
    %176 = vector.broadcast %cst_55 : f32 to vector<2x128xf32>
    %177 = arith.addf %176, %175 : vector<2x128xf32>
    %178 = arith.divf %176, %177 : vector<2x128xf32>
    %cst_56 = arith.constant 2.000000e+00 : f32
    %179 = vector.broadcast %cst_56 : f32 to vector<2x128xf32>
    %180 = arith.mulf %179, %178 : vector<2x128xf32>
    %cst_57 = arith.constant 1.000000e+00 : f32
    %181 = vector.broadcast %cst_57 : f32 to vector<2x128xf32>
    %182 = arith.subf %180, %181 : vector<2x128xf32>
    %183 = arith.select %11, %182, %178 : vector<2x128xi1>, vector<2x128xf32>
    %184 = vector.extract_strided_slice %183 {offsets = [0, 0], sizes = [2, 32], strides = [1, 1]} : vector<2x128xf32> to vector<2x32xf32>
    %185 = vector.extract_strided_slice %183 {offsets = [0, 32], sizes = [2, 32], strides = [1, 1]} : vector<2x128xf32> to vector<2x32xf32>
    %186 = vector.extract_strided_slice %183 {offsets = [0, 64], sizes = [2, 32], strides = [1, 1]} : vector<2x128xf32> to vector<2x32xf32>
    %187 = vector.extract_strided_slice %183 {offsets = [0, 96], sizes = [2, 32], strides = [1, 1]} : vector<2x128xf32> to vector<2x32xf32>
    %188 = arith.mulf %185, %143 : vector<2x32xf32>
    %189 = arith.mulf %184, %186 : vector<2x32xf32>
    %190 = arith.addf %188, %189 : vector<2x32xf32>
    %191 = math.tanh %190 : vector<2x32xf32>
    %192 = arith.mulf %187, %191 : vector<2x32xf32>
    %193 = tpu.concatenate %192, %169 in 1 : vector<2x32xf32>, vector<2x32xf32> -> vector<2x64xf32>
    %cst_58 = arith.constant dense<0.000000e+00> : vector<2x256xf32>
    %194 = tpu.matmul %193, %5, %cst_58 {dimension_numbers = #tpu.dot_dimension_numbers<[1], [0], [0], [1], [0, 0, 1, 1], [], []>} : vector<2x64xf32>, vector<64x256xf32>, vector<2x256xf32> -> vector<2x256xf32>
    %195 = vector.extract_strided_slice %194 {offsets = [0, 128], sizes = [2, 128], strides = [1, 1]} : vector<2x256xf32> to vector<2x128xf32>
    %196 = vector.broadcast %2 : vector<1x128xf32> to vector<2x128xf32>
    %197 = arith.addf %196, %195 : vector<2x128xf32>
    %198 = arith.negf %197 : vector<2x128xf32>
    %199 = math.exp %198 : vector<2x128xf32>
    %cst_59 = arith.constant 1.000000e+00 : f32
    %200 = vector.broadcast %cst_59 : f32 to vector<2x128xf32>
    %201 = arith.addf %200, %199 : vector<2x128xf32>
    %202 = arith.divf %200, %201 : vector<2x128xf32>
    %cst_60 = arith.constant 2.000000e+00 : f32
    %203 = vector.broadcast %cst_60 : f32 to vector<2x128xf32>
    %204 = arith.mulf %203, %202 : vector<2x128xf32>
    %cst_61 = arith.constant 1.000000e+00 : f32
    %205 = vector.broadcast %cst_61 : f32 to vector<2x128xf32>
    %206 = arith.subf %204, %205 : vector<2x128xf32>
    %207 = arith.select %11, %206, %202 : vector<2x128xi1>, vector<2x128xf32>
    %208 = vector.extract_strided_slice %207 {offsets = [0, 0], sizes = [2, 32], strides = [1, 1]} : vector<2x128xf32> to vector<2x32xf32>
    %209 = vector.extract_strided_slice %207 {offsets = [0, 32], sizes = [2, 32], strides = [1, 1]} : vector<2x128xf32> to vector<2x32xf32>
    %210 = vector.extract_strided_slice %207 {offsets = [0, 64], sizes = [2, 32], strides = [1, 1]} : vector<2x128xf32> to vector<2x32xf32>
    %211 = vector.extract_strided_slice %207 {offsets = [0, 96], sizes = [2, 32], strides = [1, 1]} : vector<2x128xf32> to vector<2x32xf32>
    %212 = arith.mulf %209, %167 : vector<2x32xf32>
    %213 = arith.mulf %208, %210 : vector<2x32xf32>
    %214 = arith.addf %212, %213 : vector<2x32xf32>
    %215 = math.tanh %214 : vector<2x32xf32>
    %216 = arith.mulf %211, %215 : vector<2x32xf32>
    %c4 = arith.constant 4 : index
    %c0_62 = arith.constant 0 : index
    %c0_63 = arith.constant 0 : index
    %217 = vector.load %arg8[%c4, %c0_62, %c0_63] : memref<8x2x128xf32, #tpu.memory_space<vmem>>, vector<1x2x128xf32>
    %218 = vector.shape_cast %217 : vector<1x2x128xf32> to vector<2x128xf32>
    %219 = vector.extract_strided_slice %194 {offsets = [0, 0], sizes = [2, 128], strides = [1, 1]} : vector<2x256xf32> to vector<2x128xf32>
    %220 = arith.addf %218, %219 : vector<2x128xf32>
    %221 = arith.negf %220 : vector<2x128xf32>
    %222 = math.exp %221 : vector<2x128xf32>
    %cst_64 = arith.constant 1.000000e+00 : f32
    %223 = vector.broadcast %cst_64 : f32 to vector<2x128xf32>
    %224 = arith.addf %223, %222 : vector<2x128xf32>
    %225 = arith.divf %223, %224 : vector<2x128xf32>
    %cst_65 = arith.constant 2.000000e+00 : f32
    %226 = vector.broadcast %cst_65 : f32 to vector<2x128xf32>
    %227 = arith.mulf %226, %225 : vector<2x128xf32>
    %cst_66 = arith.constant 1.000000e+00 : f32
    %228 = vector.broadcast %cst_66 : f32 to vector<2x128xf32>
    %229 = arith.subf %227, %228 : vector<2x128xf32>
    %230 = arith.select %11, %229, %225 : vector<2x128xi1>, vector<2x128xf32>
    %231 = vector.extract_strided_slice %230 {offsets = [0, 0], sizes = [2, 32], strides = [1, 1]} : vector<2x128xf32> to vector<2x32xf32>
    %232 = vector.extract_strided_slice %230 {offsets = [0, 32], sizes = [2, 32], strides = [1, 1]} : vector<2x128xf32> to vector<2x32xf32>
    %233 = vector.extract_strided_slice %230 {offsets = [0, 64], sizes = [2, 32], strides = [1, 1]} : vector<2x128xf32> to vector<2x32xf32>
    %234 = vector.extract_strided_slice %230 {offsets = [0, 96], sizes = [2, 32], strides = [1, 1]} : vector<2x128xf32> to vector<2x32xf32>
    %235 = arith.mulf %232, %190 : vector<2x32xf32>
    %236 = arith.mulf %231, %233 : vector<2x32xf32>
    %237 = arith.addf %235, %236 : vector<2x32xf32>
    %238 = math.tanh %237 : vector<2x32xf32>
    %239 = arith.mulf %234, %238 : vector<2x32xf32>
    %240 = tpu.concatenate %239, %216 in 1 : vector<2x32xf32>, vector<2x32xf32> -> vector<2x64xf32>
    %cst_67 = arith.constant dense<0.000000e+00> : vector<2x256xf32>
    %241 = tpu.matmul %240, %5, %cst_67 {dimension_numbers = #tpu.dot_dimension_numbers<[1], [0], [0], [1], [0, 0, 1, 1], [], []>} : vector<2x64xf32>, vector<64x256xf32>, vector<2x256xf32> -> vector<2x256xf32>
    %242 = vector.extract_strided_slice %241 {offsets = [0, 128], sizes = [2, 128], strides = [1, 1]} : vector<2x256xf32> to vector<2x128xf32>
    %243 = vector.broadcast %2 : vector<1x128xf32> to vector<2x128xf32>
    %244 = arith.addf %243, %242 : vector<2x128xf32>
    %245 = arith.negf %244 : vector<2x128xf32>
    %246 = math.exp %245 : vector<2x128xf32>
    %cst_68 = arith.constant 1.000000e+00 : f32
    %247 = vector.broadcast %cst_68 : f32 to vector<2x128xf32>
    %248 = arith.addf %247, %246 : vector<2x128xf32>
    %249 = arith.divf %247, %248 : vector<2x128xf32>
    %cst_69 = arith.constant 2.000000e+00 : f32
    %250 = vector.broadcast %cst_69 : f32 to vector<2x128xf32>
    %251 = arith.mulf %250, %249 : vector<2x128xf32>
    %cst_70 = arith.constant 1.000000e+00 : f32
    %252 = vector.broadcast %cst_70 : f32 to vector<2x128xf32>
    %253 = arith.subf %251, %252 : vector<2x128xf32>
    %254 = arith.select %11, %253, %249 : vector<2x128xi1>, vector<2x128xf32>
    %255 = vector.extract_strided_slice %254 {offsets = [0, 0], sizes = [2, 32], strides = [1, 1]} : vector<2x128xf32> to vector<2x32xf32>
    %256 = vector.extract_strided_slice %254 {offsets = [0, 32], sizes = [2, 32], strides = [1, 1]} : vector<2x128xf32> to vector<2x32xf32>
    %257 = vector.extract_strided_slice %254 {offsets = [0, 64], sizes = [2, 32], strides = [1, 1]} : vector<2x128xf32> to vector<2x32xf32>
    %258 = vector.extract_strided_slice %254 {offsets = [0, 96], sizes = [2, 32], strides = [1, 1]} : vector<2x128xf32> to vector<2x32xf32>
    %259 = arith.mulf %256, %214 : vector<2x32xf32>
    %260 = arith.mulf %255, %257 : vector<2x32xf32>
    %261 = arith.addf %259, %260 : vector<2x32xf32>
    %262 = math.tanh %261 : vector<2x32xf32>
    %263 = arith.mulf %258, %262 : vector<2x32xf32>
    %c5 = arith.constant 5 : index
    %c0_71 = arith.constant 0 : index
    %c0_72 = arith.constant 0 : index
    %264 = vector.load %arg8[%c5, %c0_71, %c0_72] : memref<8x2x128xf32, #tpu.memory_space<vmem>>, vector<1x2x128xf32>
    %265 = vector.shape_cast %264 : vector<1x2x128xf32> to vector<2x128xf32>
    %266 = vector.extract_strided_slice %241 {offsets = [0, 0], sizes = [2, 128], strides = [1, 1]} : vector<2x256xf32> to vector<2x128xf32>
    %267 = arith.addf %265, %266 : vector<2x128xf32>
    %268 = arith.negf %267 : vector<2x128xf32>
    %269 = math.exp %268 : vector<2x128xf32>
    %cst_73 = arith.constant 1.000000e+00 : f32
    %270 = vector.broadcast %cst_73 : f32 to vector<2x128xf32>
    %271 = arith.addf %270, %269 : vector<2x128xf32>
    %272 = arith.divf %270, %271 : vector<2x128xf32>
    %cst_74 = arith.constant 2.000000e+00 : f32
    %273 = vector.broadcast %cst_74 : f32 to vector<2x128xf32>
    %274 = arith.mulf %273, %272 : vector<2x128xf32>
    %cst_75 = arith.constant 1.000000e+00 : f32
    %275 = vector.broadcast %cst_75 : f32 to vector<2x128xf32>
    %276 = arith.subf %274, %275 : vector<2x128xf32>
    %277 = arith.select %11, %276, %272 : vector<2x128xi1>, vector<2x128xf32>
    %278 = vector.extract_strided_slice %277 {offsets = [0, 0], sizes = [2, 32], strides = [1, 1]} : vector<2x128xf32> to vector<2x32xf32>
    %279 = vector.extract_strided_slice %277 {offsets = [0, 32], sizes = [2, 32], strides = [1, 1]} : vector<2x128xf32> to vector<2x32xf32>
    %280 = vector.extract_strided_slice %277 {offsets = [0, 64], sizes = [2, 32], strides = [1, 1]} : vector<2x128xf32> to vector<2x32xf32>
    %281 = vector.extract_strided_slice %277 {offsets = [0, 96], sizes = [2, 32], strides = [1, 1]} : vector<2x128xf32> to vector<2x32xf32>
    %282 = arith.mulf %279, %237 : vector<2x32xf32>
    %283 = arith.mulf %278, %280 : vector<2x32xf32>
    %284 = arith.addf %282, %283 : vector<2x32xf32>
    %285 = math.tanh %284 : vector<2x32xf32>
    %286 = arith.mulf %281, %285 : vector<2x32xf32>
    %287 = tpu.concatenate %286, %263 in 1 : vector<2x32xf32>, vector<2x32xf32> -> vector<2x64xf32>
    %cst_76 = arith.constant dense<0.000000e+00> : vector<2x256xf32>
    %288 = tpu.matmul %287, %5, %cst_76 {dimension_numbers = #tpu.dot_dimension_numbers<[1], [0], [0], [1], [0, 0, 1, 1], [], []>} : vector<2x64xf32>, vector<64x256xf32>, vector<2x256xf32> -> vector<2x256xf32>
    %289 = vector.extract_strided_slice %288 {offsets = [0, 128], sizes = [2, 128], strides = [1, 1]} : vector<2x256xf32> to vector<2x128xf32>
    %290 = vector.broadcast %2 : vector<1x128xf32> to vector<2x128xf32>
    %291 = arith.addf %290, %289 : vector<2x128xf32>
    %292 = arith.negf %291 : vector<2x128xf32>
    %293 = math.exp %292 : vector<2x128xf32>
    %cst_77 = arith.constant 1.000000e+00 : f32
    %294 = vector.broadcast %cst_77 : f32 to vector<2x128xf32>
    %295 = arith.addf %294, %293 : vector<2x128xf32>
    %296 = arith.divf %294, %295 : vector<2x128xf32>
    %cst_78 = arith.constant 2.000000e+00 : f32
    %297 = vector.broadcast %cst_78 : f32 to vector<2x128xf32>
    %298 = arith.mulf %297, %296 : vector<2x128xf32>
    %cst_79 = arith.constant 1.000000e+00 : f32
    %299 = vector.broadcast %cst_79 : f32 to vector<2x128xf32>
    %300 = arith.subf %298, %299 : vector<2x128xf32>
    %301 = arith.select %11, %300, %296 : vector<2x128xi1>, vector<2x128xf32>
    %302 = vector.extract_strided_slice %301 {offsets = [0, 0], sizes = [2, 32], strides = [1, 1]} : vector<2x128xf32> to vector<2x32xf32>
    %303 = vector.extract_strided_slice %301 {offsets = [0, 32], sizes = [2, 32], strides = [1, 1]} : vector<2x128xf32> to vector<2x32xf32>
    %304 = vector.extract_strided_slice %301 {offsets = [0, 64], sizes = [2, 32], strides = [1, 1]} : vector<2x128xf32> to vector<2x32xf32>
    %305 = vector.extract_strided_slice %301 {offsets = [0, 96], sizes = [2, 32], strides = [1, 1]} : vector<2x128xf32> to vector<2x32xf32>
    %306 = arith.mulf %303, %261 : vector<2x32xf32>
    %307 = arith.mulf %302, %304 : vector<2x32xf32>
    %308 = arith.addf %306, %307 : vector<2x32xf32>
    %309 = math.tanh %308 : vector<2x32xf32>
    %310 = arith.mulf %305, %309 : vector<2x32xf32>
    %c6 = arith.constant 6 : index
    %c0_80 = arith.constant 0 : index
    %c0_81 = arith.constant 0 : index
    %311 = vector.load %arg8[%c6, %c0_80, %c0_81] : memref<8x2x128xf32, #tpu.memory_space<vmem>>, vector<1x2x128xf32>
    %312 = vector.shape_cast %311 : vector<1x2x128xf32> to vector<2x128xf32>
    %313 = vector.extract_strided_slice %288 {offsets = [0, 0], sizes = [2, 128], strides = [1, 1]} : vector<2x256xf32> to vector<2x128xf32>
    %314 = arith.addf %312, %313 : vector<2x128xf32>
    %315 = arith.negf %314 : vector<2x128xf32>
    %316 = math.exp %315 : vector<2x128xf32>
    %cst_82 = arith.constant 1.000000e+00 : f32
    %317 = vector.broadcast %cst_82 : f32 to vector<2x128xf32>
    %318 = arith.addf %317, %316 : vector<2x128xf32>
    %319 = arith.divf %317, %318 : vector<2x128xf32>
    %cst_83 = arith.constant 2.000000e+00 : f32
    %320 = vector.broadcast %cst_83 : f32 to vector<2x128xf32>
    %321 = arith.mulf %320, %319 : vector<2x128xf32>
    %cst_84 = arith.constant 1.000000e+00 : f32
    %322 = vector.broadcast %cst_84 : f32 to vector<2x128xf32>
    %323 = arith.subf %321, %322 : vector<2x128xf32>
    %324 = arith.select %11, %323, %319 : vector<2x128xi1>, vector<2x128xf32>
    %325 = vector.extract_strided_slice %324 {offsets = [0, 0], sizes = [2, 32], strides = [1, 1]} : vector<2x128xf32> to vector<2x32xf32>
    %326 = vector.extract_strided_slice %324 {offsets = [0, 32], sizes = [2, 32], strides = [1, 1]} : vector<2x128xf32> to vector<2x32xf32>
    %327 = vector.extract_strided_slice %324 {offsets = [0, 64], sizes = [2, 32], strides = [1, 1]} : vector<2x128xf32> to vector<2x32xf32>
    %328 = vector.extract_strided_slice %324 {offsets = [0, 96], sizes = [2, 32], strides = [1, 1]} : vector<2x128xf32> to vector<2x32xf32>
    %329 = arith.mulf %326, %284 : vector<2x32xf32>
    %330 = arith.mulf %325, %327 : vector<2x32xf32>
    %331 = arith.addf %329, %330 : vector<2x32xf32>
    %332 = math.tanh %331 : vector<2x32xf32>
    %333 = arith.mulf %328, %332 : vector<2x32xf32>
    %334 = tpu.concatenate %333, %310 in 1 : vector<2x32xf32>, vector<2x32xf32> -> vector<2x64xf32>
    %cst_85 = arith.constant dense<0.000000e+00> : vector<2x256xf32>
    %335 = tpu.matmul %334, %5, %cst_85 {dimension_numbers = #tpu.dot_dimension_numbers<[1], [0], [0], [1], [0, 0, 1, 1], [], []>} : vector<2x64xf32>, vector<64x256xf32>, vector<2x256xf32> -> vector<2x256xf32>
    %336 = vector.extract_strided_slice %335 {offsets = [0, 128], sizes = [2, 128], strides = [1, 1]} : vector<2x256xf32> to vector<2x128xf32>
    %337 = vector.broadcast %2 : vector<1x128xf32> to vector<2x128xf32>
    %338 = arith.addf %337, %336 : vector<2x128xf32>
    %339 = arith.negf %338 : vector<2x128xf32>
    %340 = math.exp %339 : vector<2x128xf32>
    %cst_86 = arith.constant 1.000000e+00 : f32
    %341 = vector.broadcast %cst_86 : f32 to vector<2x128xf32>
    %342 = arith.addf %341, %340 : vector<2x128xf32>
    %343 = arith.divf %341, %342 : vector<2x128xf32>
    %cst_87 = arith.constant 2.000000e+00 : f32
    %344 = vector.broadcast %cst_87 : f32 to vector<2x128xf32>
    %345 = arith.mulf %344, %343 : vector<2x128xf32>
    %cst_88 = arith.constant 1.000000e+00 : f32
    %346 = vector.broadcast %cst_88 : f32 to vector<2x128xf32>
    %347 = arith.subf %345, %346 : vector<2x128xf32>
    %348 = arith.select %11, %347, %343 : vector<2x128xi1>, vector<2x128xf32>
    %349 = vector.extract_strided_slice %348 {offsets = [0, 0], sizes = [2, 32], strides = [1, 1]} : vector<2x128xf32> to vector<2x32xf32>
    %350 = vector.extract_strided_slice %348 {offsets = [0, 32], sizes = [2, 32], strides = [1, 1]} : vector<2x128xf32> to vector<2x32xf32>
    %351 = vector.extract_strided_slice %348 {offsets = [0, 64], sizes = [2, 32], strides = [1, 1]} : vector<2x128xf32> to vector<2x32xf32>
    %352 = vector.extract_strided_slice %348 {offsets = [0, 96], sizes = [2, 32], strides = [1, 1]} : vector<2x128xf32> to vector<2x32xf32>
    %353 = arith.mulf %350, %308 : vector<2x32xf32>
    %354 = arith.mulf %349, %351 : vector<2x32xf32>
    %355 = arith.addf %353, %354 : vector<2x32xf32>
    %356 = math.tanh %355 : vector<2x32xf32>
    %357 = arith.mulf %352, %356 : vector<2x32xf32>
    %c7 = arith.constant 7 : index
    %c0_89 = arith.constant 0 : index
    %c0_90 = arith.constant 0 : index
    %358 = vector.load %arg8[%c7, %c0_89, %c0_90] : memref<8x2x128xf32, #tpu.memory_space<vmem>>, vector<1x2x128xf32>
    %359 = vector.shape_cast %358 : vector<1x2x128xf32> to vector<2x128xf32>
    %360 = vector.extract_strided_slice %335 {offsets = [0, 0], sizes = [2, 128], strides = [1, 1]} : vector<2x256xf32> to vector<2x128xf32>
    %361 = arith.addf %359, %360 : vector<2x128xf32>
    %362 = arith.negf %361 : vector<2x128xf32>
    %363 = math.exp %362 : vector<2x128xf32>
    %cst_91 = arith.constant 1.000000e+00 : f32
    %364 = vector.broadcast %cst_91 : f32 to vector<2x128xf32>
    %365 = arith.addf %364, %363 : vector<2x128xf32>
    %366 = arith.divf %364, %365 : vector<2x128xf32>
    %cst_92 = arith.constant 2.000000e+00 : f32
    %367 = vector.broadcast %cst_92 : f32 to vector<2x128xf32>
    %368 = arith.mulf %367, %366 : vector<2x128xf32>
    %cst_93 = arith.constant 1.000000e+00 : f32
    %369 = vector.broadcast %cst_93 : f32 to vector<2x128xf32>
    %370 = arith.subf %368, %369 : vector<2x128xf32>
    %371 = arith.select %11, %370, %366 : vector<2x128xi1>, vector<2x128xf32>
    %372 = vector.extract_strided_slice %371 {offsets = [0, 0], sizes = [2, 32], strides = [1, 1]} : vector<2x128xf32> to vector<2x32xf32>
    %373 = vector.extract_strided_slice %371 {offsets = [0, 32], sizes = [2, 32], strides = [1, 1]} : vector<2x128xf32> to vector<2x32xf32>
    %374 = vector.extract_strided_slice %371 {offsets = [0, 64], sizes = [2, 32], strides = [1, 1]} : vector<2x128xf32> to vector<2x32xf32>
    %375 = vector.extract_strided_slice %371 {offsets = [0, 96], sizes = [2, 32], strides = [1, 1]} : vector<2x128xf32> to vector<2x32xf32>
    %376 = arith.mulf %373, %331 : vector<2x32xf32>
    %377 = arith.mulf %372, %374 : vector<2x32xf32>
    %378 = arith.addf %376, %377 : vector<2x32xf32>
    %379 = math.tanh %378 : vector<2x32xf32>
    %380 = arith.mulf %375, %379 : vector<2x32xf32>
    %381 = tpu.concatenate %380, %357 in 1 : vector<2x32xf32>, vector<2x32xf32> -> vector<2x64xf32>
    %cst_94 = arith.constant dense<0.000000e+00> : vector<2x256xf32>
    %382 = tpu.matmul %381, %5, %cst_94 {dimension_numbers = #tpu.dot_dimension_numbers<[1], [0], [0], [1], [0, 0, 1, 1], [], []>} : vector<2x64xf32>, vector<64x256xf32>, vector<2x256xf32> -> vector<2x256xf32>
    %383 = vector.extract_strided_slice %382 {offsets = [0, 128], sizes = [2, 128], strides = [1, 1]} : vector<2x256xf32> to vector<2x128xf32>
    %384 = vector.broadcast %2 : vector<1x128xf32> to vector<2x128xf32>
    %385 = arith.addf %384, %383 : vector<2x128xf32>
    %386 = arith.negf %385 : vector<2x128xf32>
    %387 = math.exp %386 : vector<2x128xf32>
    %cst_95 = arith.constant 1.000000e+00 : f32
    %388 = vector.broadcast %cst_95 : f32 to vector<2x128xf32>
    %389 = arith.addf %388, %387 : vector<2x128xf32>
    %390 = arith.divf %388, %389 : vector<2x128xf32>
    %cst_96 = arith.constant 2.000000e+00 : f32
    %391 = vector.broadcast %cst_96 : f32 to vector<2x128xf32>
    %392 = arith.mulf %391, %390 : vector<2x128xf32>
    %cst_97 = arith.constant 1.000000e+00 : f32
    %393 = vector.broadcast %cst_97 : f32 to vector<2x128xf32>
    %394 = arith.subf %392, %393 : vector<2x128xf32>
    %395 = arith.select %11, %394, %390 : vector<2x128xi1>, vector<2x128xf32>
    %396 = vector.extract_strided_slice %395 {offsets = [0, 0], sizes = [2, 32], strides = [1, 1]} : vector<2x128xf32> to vector<2x32xf32>
    %397 = vector.extract_strided_slice %395 {offsets = [0, 32], sizes = [2, 32], strides = [1, 1]} : vector<2x128xf32> to vector<2x32xf32>
    %398 = vector.extract_strided_slice %395 {offsets = [0, 64], sizes = [2, 32], strides = [1, 1]} : vector<2x128xf32> to vector<2x32xf32>
    %399 = vector.extract_strided_slice %395 {offsets = [0, 96], sizes = [2, 32], strides = [1, 1]} : vector<2x128xf32> to vector<2x32xf32>
    %400 = arith.mulf %397, %355 : vector<2x32xf32>
    %401 = arith.mulf %396, %398 : vector<2x32xf32>
    %402 = arith.addf %400, %401 : vector<2x32xf32>
    %403 = math.tanh %402 : vector<2x32xf32>
    %404 = arith.mulf %399, %403 : vector<2x32xf32>
    %c0_98 = arith.constant 0 : index
    %c0_99 = arith.constant 0 : index
    %c0_100 = arith.constant 0 : index
    %405 = vector.load %arg6[%c0_98, %c0_99, %c0_100] : memref<2x2x32xf32, #tpu.memory_space<vmem>>, vector<1x2x32xf32>
    %406 = vector.shape_cast %405 : vector<1x2x32xf32> to vector<2x32xf32>
    %407 = vector.shape_cast %380 : vector<2x32xf32> to vector<1x2x32xf32>
    tpu.vector_store %arg6[%c0_98, %c0_99, %c0_100], %407 {strides = array<i32>} : memref<2x2x32xf32, #tpu.memory_space<vmem>>, vector<1x2x32xf32>,
    %c1_101 = arith.constant 1 : index
    %c0_102 = arith.constant 0 : index
    %c0_103 = arith.constant 0 : index
    %408 = vector.load %arg6[%c1_101, %c0_102, %c0_103] : memref<2x2x32xf32, #tpu.memory_space<vmem>>, vector<1x2x32xf32>
    %409 = vector.shape_cast %408 : vector<1x2x32xf32> to vector<2x32xf32>
    %410 = vector.shape_cast %404 : vector<2x32xf32> to vector<1x2x32xf32>
    tpu.vector_store %arg6[%c1_101, %c0_102, %c0_103], %410 {strides = array<i32>} : memref<2x2x32xf32, #tpu.memory_space<vmem>>, vector<1x2x32xf32>,
    %c0_104 = arith.constant 0 : index
    %c0_105 = arith.constant 0 : index
    %c0_106 = arith.constant 0 : index
    %411 = vector.load %arg7[%c0_104, %c0_105, %c0_106] : memref<2x2x32xf32, #tpu.memory_space<vmem>>, vector<1x2x32xf32>
    %412 = vector.shape_cast %411 : vector<1x2x32xf32> to vector<2x32xf32>
    %413 = vector.shape_cast %378 : vector<2x32xf32> to vector<1x2x32xf32>
    tpu.vector_store %arg7[%c0_104, %c0_105, %c0_106], %413 {strides = array<i32>} : memref<2x2x32xf32, #tpu.memory_space<vmem>>, vector<1x2x32xf32>,
    %c1_107 = arith.constant 1 : index
    %c0_108 = arith.constant 0 : index
    %c0_109 = arith.constant 0 : index
    %414 = vector.load %arg7[%c1_107, %c0_108, %c0_109] : memref<2x2x32xf32, #tpu.memory_space<vmem>>, vector<1x2x32xf32>
    %415 = vector.shape_cast %414 : vector<1x2x32xf32> to vector<2x32xf32>
    %416 = vector.shape_cast %402 : vector<2x32xf32> to vector<1x2x32xf32>
    tpu.vector_store %arg7[%c1_107, %c0_108, %c0_109], %416 {strides = array<i32>} : memref<2x2x32xf32, #tpu.memory_space<vmem>>, vector<1x2x32xf32>,
    %417 = vector.shape_cast %75 : vector<2x32xf32> to vector<2x1x32xf32>
    %418 = vector.shape_cast %122 : vector<2x32xf32> to vector<2x1x32xf32>
    %419 = vector.shape_cast %169 : vector<2x32xf32> to vector<2x1x32xf32>
    %420 = vector.shape_cast %216 : vector<2x32xf32> to vector<2x1x32xf32>
    %421 = vector.shape_cast %263 : vector<2x32xf32> to vector<2x1x32xf32>
    %422 = vector.shape_cast %310 : vector<2x32xf32> to vector<2x1x32xf32>
    %423 = vector.shape_cast %357 : vector<2x32xf32> to vector<2x1x32xf32>
    %424 = vector.shape_cast %404 : vector<2x32xf32> to vector<2x1x32xf32>
    %425 = tpu.concatenate %417, %418, %419, %420, %421, %422, %423, %424 in 1 : vector<2x1x32xf32>, vector<2x1x32xf32>, vector<2x1x32xf32>, vector<2x1x32xf32>, vector<2x1x32xf32>, vector<2x1x32xf32>, vector<2x1x32xf32>, vector<2x1x32xf32> -> vector<2x8x32xf32>
    %426 = vector.shape_cast %425 : vector<2x8x32xf32> to vector<16x32xf32>
    %cst_110 = arith.constant dense<0.000000e+00> : vector<16x128xf32>
    %427 = tpu.matmul %426, %3, %cst_110 {dimension_numbers = #tpu.dot_dimension_numbers<[1], [0], [0], [1], [0, 0, 1, 1], [], []>} : vector<16x32xf32>, vector<32x128xf32>, vector<16x128xf32> -> vector<16x128xf32>
    %428 = vector.broadcast %4 : vector<1x128xf32> to vector<16x128xf32>
    %429 = arith.addf %427, %428 : vector<16x128xf32>
    %c0_111 = arith.constant 0 : index
    %c0_112 = arith.constant 0 : index
    %430 = vector.load %arg5[%c0_111, %c0_112] : memref<16x128xf32, #tpu.memory_space<vmem>>, vector<16x128xf32>
    tpu.vector_store %arg5[%c0_111, %c0_112], %429 {strides = array<i32>} : memref<16x128xf32, #tpu.memory_space<vmem>>, vector<16x128xf32>,
    return
  }
}

</mosaic_0001>

<bundles_post_ra>
// kernel: rnn_model_forward.1
= control target key start
LH: loop header
LB: loop body
LE: loop exit
PB: predicated region body
PF: predicated region fallthrough
CT: control target
= control target key end

     0   :  { %13 = vsyncpa [#allocation4], 0  ;;  %s2742_s0 = inlined_call_operand.hbm [shape: f32[16,16], index: 0, kind: input, shape index: {}]   ;;  %s2743_s1 = inlined_call_operand.vmem [shape: f32[2,2,32], index: 1, kind: input, shape index: {}]   ;;  %s2744_s2 = inlined_call_operand.vmem [shape: f32[2,2,32], index: 2, kind: input, shape index: {}]   ;;  %s2745_s3 = inlined_call_operand.hbm [shape: f32[64,128], index: 3, kind: input, shape index: {}]   ;;  %s2746_s4 = inlined_call_operand.hbm [shape: f32[64,256], index: 4, kind: input, shape index: {}]   ;;  %s2747_s5 = inlined_call_operand.vmem [shape: f32[16,128], index: 5, kind: output, shape index: {0}]   ;;  %s2748_s6 = inlined_call_operand.hbm [shape: f32[2,2,32], index: 6, kind: output, shape index: {1}]   ;;  %s2749_s7 = inlined_call_operand.hbm [shape: f32[2,2,32], index: 7, kind: output, shape index: {2}]  }
   0x1   :  { %14 = vsyncpa [#allocation7], 0 }
   0x2   :  { %15 = vsyncpa [#allocation5], 0 }
   0x3   :  { %16 = vsyncpa [#allocation11], 0  ;;  %s2198_s24 = smov [#allocation6]   ;;  %s2199_s26 = smov [#allocation3]  }
   0x4   :  { %s38_s25 = sshll.u32 %s2198_s24, 4  ;;  %s22_s27 = sshll.u32 %s2199_s26, 4  ;;  %s39_s25 = int_to_ptr.vmem [resolvable:$true] %s38_s25  ;;  %s23_s27 = int_to_ptr.vmem [resolvable:$true] %s22_s27 }
   0x5   :  { %s2098_s28 = scalar_lea.vmem %s39_s25, 1024  ;;  %p2103_p1 = scmp.lt.s32.totalorder %s39_s25, %s39_s25 }
   0x6   :  { %p2099_p0 = scmp.ne.s32.totalorder %s39_s25, %s2098_s28  ;;  %p2104_p2 = scmp.lt.s32.totalorder %s2098_s28, %s2098_s28 }
   0x8   :  { %p2105_p3 = por %p2104_p2, %p2103_p1 }
   0xa   :  { %p2106_p4 = pnand %p2105_p3, %p2099_p0 }
   0xc   :  { %2109 = shalt.err (!%p2106_p4)
}
   0xd   :  { %s2200_s29 = smov 128   ;;  %s2201_s30 = smov 8  }
   0xe   :  { %44 = dma.hbm_to_vmem [thread:$0]  %s2745_s3, 1024, %s39_s25, [#allocation7], %s2200_s29, %s2200_s29, %s2201_s30  }
   0xf   :  { %s2118_s10 = scalar_lea.vmem %s23_s27, 256  ;;  %p2123_p6 = scmp.lt.s32.totalorder %s23_s27, %s23_s27 }
  0x10   :  { %p2119_p5 = scmp.ne.s32.totalorder %s23_s27, %s2118_s10  ;;  %p2124_p7 = scmp.lt.s32.totalorder %s2118_s10, %s2118_s10 }
  0x12   :  { %p2125_p8 = por %p2124_p7, %p2123_p6 }
  0x14   :  { %p2126_p9 = pnand %p2125_p8, %p2119_p5 }
  0x16   :  { %2129 = shalt.err (!%p2126_p9)
}
  0x17   :  { %28 = dma.hbm_to_vmem [thread:$0]  %s2742_s0, 256, %s23_s27, [#allocation4], %s2200_s29, %s2200_s29, %s2201_s30  }
  0x18   :  { %s2202_s13 = smov [#allocation8]  }
  0x19   :  { %s50_s14 = sshll.u32 %s2202_s13, 4  ;;  %s51_s14 = int_to_ptr.vmem [resolvable:$true] %s50_s14 }
  0x1a   :  { %s2138_s15 = scalar_lea.vmem %s51_s14, 2048  ;;  %p2143_p11 = scmp.lt.s32.totalorder %s51_s14, %s51_s14 }
  0x1b   :  { %p2139_p10 = scmp.ne.s32.totalorder %s51_s14, %s2138_s15  ;;  %p2144_p12 = scmp.lt.s32.totalorder %s2138_s15, %s2138_s15 }
  0x1d   :  { %p2145_p13 = por %p2144_p12, %p2143_p11 }
  0x1f   :  { %p2146_p0 = pnand %p2145_p13, %p2139_p10 }
  0x21   :  { %2149 = shalt.err (!%p2146_p0)
}
  0x22   :  { %s2203_s3 = smov 256   ;;  %s2204_s16 = smov 16  }
  0x23   :  { %56 = dma.hbm_to_vmem [thread:$0]  %s2746_s4, 2048, %s51_s14, [#allocation7], %s2203_s3, %s2203_s3, %s2204_s16  }
  0x24   :  { %2190 = dma.done.wait [#allocation4], 256  }
  0x25   :  { %2191 = vsyncadd [#allocation4], 4294967040 }
  0x26   :  { %2192 = dma.done.wait [#allocation7], 3072  }
  0x27   :  { %2193 = vsyncadd [#allocation7], 4294964224  ;;  %v2205_v0 = vmov 0.0   ;;  %vm102_vm0 = vcmask 130048   ;;  %v1886_v1 = vld [vmem:[%s2743_s1 + $0x2] sm:$0x3]  ;;  %v91_v26 = vlaneseq }
  0x28   :  { %338 = vmatprep.mubr.f32.mxu1 %v2205_v0  ;;  %v67_v2 = vld [vmem:[#allocation6 + $0x8] sm:$0xff]  ;;  %v66_v3 = vld [vmem:[#allocation6] sm:$0xff]  ;;  %s2206_s20 = smov 32   ;;  %v96_v4 = vld [vmem:[#allocation3] sm:$0xff]  ;;  %vm268_vm1 = vcmask 261120   ;;  %vm270_vm2 = vcmask 523264  }
  0x29   :  { %265 = vrot.lane.b32.xlu0 %v1886_v1, %s2206_s20  ;;  %1943 = vmatprep.subr.mxu0 %v67_v2  ;;  %v2269_v5 = vld [vmem:[#allocation8 + $0x78] sm:$0xff]  ;;  %v2272_v7 = vld [vmem:[#allocation8 + $0x70] sm:$0xff]  ;;  %v2274_v8 = vld [vmem:[#allocation8 + $0x68] sm:$0xff]  ;;  %v2207_v27 = vmov 1983009808   ;;  %v2367_v30 = vshrl.u32 %v91_v26, 7 }
  0x2a   :  { %1944 = vmatpush3.msra.mxu0 %v67_v2  ;;  %1947 = vmatprep.mubr.msk.f32.mxu0 %vm102_vm0, %v96_v4  ;;  %v97_v6 = vld [vmem:[#allocation3 + $0x8] sm:$0xff]  ;;  %v2277_v9 = vld [vmem:[#allocation8 + $0x60] sm:$0xff]  ;;  %v2284_v11 = vld [vmem:[#allocation8 + $0x50] sm:$0xff]  ;;  %v186_v28 = vunpack.c.l.s4 %v2207_v27  ;;  %v2208_v31 = vmov 1934713408   ;;  %vm1729_vm6 = vcmask 1040384  }
  0x2b   :  { %1945 = vmatprep.subr.mxu0 %v66_v3  ;;  %290 = vmatprep.subr.mxu1 %v2269_v5  ;;  %v2280_v10 = vld [vmem:[#allocation8 + $0x58] sm:$0xff]  ;;  %v2287_v12 = vld [vmem:[#allocation8 + $0x48] sm:$0xff]  ;;  %v2291_v13 = vld [vmem:[#allocation8 + $0x40] sm:$0xff]  ;;  %v217_v32 = vunpack.c.l.s4 %v2208_v31  ;;  %vm1732_vm7 = vcmask 1041408   ;;  %vm1735_vm8 = vcmask 1042432   ;;  %vm1738_vm9 = vcmask 1043456  }
  0x2c   :  { %1946 = vmatpush3.msra.mxu0 %v66_v3  ;;  %291 = vmatpush1.msra.mxu1 %v2272_v7  ;;  %v259_v14 = vld [vmem:[%s2744_s2] sm:$0x3]  ;;  %v2298_v15 = vld [vmem:[#allocation8 + $0x38] sm:$0xff]  ;;  %v2302_v16 = vld [vmem:[#allocation8 + $0x30] sm:$0xff]  ;;  %v187_v29 = vunpack.c.0.s8 %v186_v28  ;;  %v92_v3 = vand.u32 127, %v91_v26  ;;  %vm1741_vm10 = vcmask 1044480  }
  0x2d   :  { %1948 = vmatmul.mubr.msk.f32.vlgmr.msra.gmra.mxu0 %vm102_vm0, %v97_v6  ;;  %292 = vmatprep.subr.mxu1 %v2274_v8  ;;  %v2306_v17 = vld [vmem:[#allocation8 + $0x28] sm:$0xff]  ;;  %v2310_v18 = vld [vmem:[#allocation8 + $0x20] sm:$0xff]  ;;  %v2314_v19 = vld [vmem:[#allocation8 + $0x18] sm:$0xff]  ;;  %v218_v37 = vunpack.c.0.s8 %v217_v32  ;;  %vm1744_vm11 = vcmask 1045504   ;;  %vm1462_vm12 = vcmask 254976   ;;  %vm1747_vm13 = vcmask 1046528  }
  0x2e   :  { %293 = vmatpush1.msra.mxu1 %v2277_v9  ;;  %400 = vmatprep.subr.mxu0 %v2269_v5  ;;  %v2318_v20 = vld [vmem:[#allocation8 + $0x10] sm:$0xff]  ;;  %v2322_v21 = vld [vmem:[#allocation8 + $0x8] sm:$0xff]  ;;  %v2326_v22 = vld [vmem:[#allocation8] sm:$0xff]  ;;  %v190_v34 = vsub.s32 %v187_v29, %v2367_v30  ;;  %vm93_vm3 = vcmp.ge.s32.totalorder %v92_v3, 64  ;;  %vm94_vm4 = vcmp.lt.s32.totalorder %v92_v3, 96  ;;  %s2212_s26 = smov [#allocation9]  }
  0x2f   :  { %294 = vmatprep.subr.mxu1 %v2280_v10  ;;  %401 = vmatpush1.msra.mxu0 %v2272_v7  ;;  %v258_v23 = vld [vmem:[%s2743_s1] sm:$0x3]  ;;  %v1879_v33 = vld [vmem:[#allocation6 + $0x10] ss:$0 sm:$0xff]  ;;  %v221_v45 = vsub.s32 %v218_v37, %v2367_v30  ;;  %vm2377_vm5 = vmand %vm93_vm3, %vm94_vm4  ;;  %s2209_s1 = smov 64   ;;  %s1848_s27 = sshll.u32 %s2212_s26, 4  ;;  %s1849_s27 = int_to_ptr.vmem [resolvable:$true] %s1848_s27 }
  0x30   :  { %295 = vmatpush1.msra.mxu1 %v2284_v11  ;;  %356 = vrot.lane.b32.xlu1 %v259_v14, %s2206_s20  ;;  %v70_v14 = vld [vmem:[#allocation6 + $0x18] sm:$0xff]  ;;  %s2213_s28 = smov [#allocation10]   ;;  %s2150_s30 = scalar_lea.vmem %s1849_s27, 64 }
  0x31   :  { %296 = vmatprep.subr.mxu1 %v2287_v12  ;;  %402 = vmatprep.subr.mxu0 %v2274_v8  ;;  %s1860_s29 = sshll.u32 %s2213_s28, 4  ;;  %p2151_p1 = scmp.ne.s32.totalorder %s1849_s27, %s2150_s30  ;;  %s1861_s29 = int_to_ptr.vmem [resolvable:$true] %s1860_s29 }
  0x32   :  { %297 = vmatpush1.msra.mxu1 %v2291_v13  ;;  %403 = vmatpush1.msra.mxu0 %v2277_v9  ;;  %p2155_p2 = scmp.lt.s32.totalorder %s1849_s27, %s1849_s27  ;;  %p2156_p3 = scmp.lt.s32.totalorder %s2150_s30, %s2150_s30 }
  0x33   :  { %298 = vmatprep.subr.mxu1 %v2298_v15  ;;  %404 = vmatprep.subr.mxu0 %v2280_v10 }
  0x34   :  { %299 = vmatpush1.msra.mxu1 %v2302_v16  ;;  %405 = vmatpush1.msra.mxu0 %v2284_v11  ;;  %p2157_p4 = por %p2156_p3, %p2155_p2 }
  0x35   :  { %300 = vmatprep.subr.mxu1 %v2306_v17  ;;  %406 = vmatprep.subr.mxu0 %v2287_v12 }
  0x36   :  { %301 = vmatpush1.msra.mxu1 %v2310_v18  ;;  %407 = vmatpush1.msra.mxu0 %v2291_v13  ;;  %p2158_p5 = pnand %p2157_p4, %p2151_p1 }
  0x37   :  { %302 = vmatprep.subr.mxu1 %v2314_v19  ;;  %408 = vmatprep.subr.mxu0 %v2298_v15 }
  0x38   :  { %303 = vmatpush1.msra.mxu1 %v2318_v20  ;;  %409 = vmatpush1.msra.mxu0 %v2302_v16 }
  0x39   :  { %304 = vmatprep.subr.mxu1 %v2322_v21  ;;  %410 = vmatprep.subr.mxu0 %v2306_v17 }
  0x3a   :  { %305 = vmatpush1.msra.mxu1 %v2326_v22  ;;  %411 = vmatpush1.msra.mxu0 %v2310_v18 }
  0x3b   :  { %412 = vmatprep.subr.mxu0 %v2314_v19  ;;  %448 = vmatprep.mubr.f32.mxu0 %v2205_v0 }
  0x3c   :  { %413 = vmatpush1.msra.mxu0 %v2318_v20  ;;  %547 = vmatprep.subr.mxu1 %v2269_v5 }
  0x3d   :  { %414 = vmatprep.subr.mxu0 %v2322_v21 }
  0x3e   :  { %415 = vmatpush1.msra.mxu0 %v2326_v22 }
  0x3f   :  { %686 = vmatprep.subr.mxu0 %v2269_v5 }
  0x9b   :  { %v2345_v24 = vpop.permute.xlu0 %265 }
  0x9c   :  { %v269_v25 = vsel %vm268_vm1, %v258_v23, %v2345_v24 }
  0x9d   :  { %1888 = vmatmul.mubr.msk.f32.vlgmr.msra.gmra.mxu1 %vm270_vm2, %v269_v25 }
  0x9e   :  { %548 = vmatpush1.msra.mxu1 %v2272_v7  ;;  %595 = vmatprep.mubr.f32.mxu1 %v2205_v0 }
  0x9f   :  { %549 = vmatprep.subr.mxu1 %v2274_v8 }
  0xa0   :  { %550 = vmatpush1.msra.mxu1 %v2277_v9 }
  0xa1   :  { %551 = vmatprep.subr.mxu1 %v2280_v10 }
  0xa2   :  { %552 = vmatpush1.msra.mxu1 %v2284_v11  ;;  %v357_v26 = vpop.permute.xlu1 %356 }
  0xa3   :  { %553 = vmatprep.subr.mxu1 %v2287_v12 }
  0xa4   :  { %554 = vmatpush1.msra.mxu1 %v2291_v13 }
  0xa5   :  { %555 = vmatprep.subr.mxu1 %v2298_v15 }
  0xa6   :  { %556 = vmatpush1.msra.mxu1 %v2302_v16 }
  0xa7   :  { %557 = vmatprep.subr.mxu1 %v2306_v17 }
  0xa8   :  { %558 = vmatpush1.msra.mxu1 %v2310_v18 }
  0xa9   :  { %559 = vmatprep.subr.mxu1 %v2314_v19 }
  0xaa   :  { %560 = vmatpush1.msra.mxu1 %v2318_v20 }
  0xab   :  { %561 = vmatprep.subr.mxu1 %v2322_v21 }
  0xac   :  { %562 = vmatpush1.msra.mxu1 %v2326_v22 }
  0xad   :  { %825 = vmatprep.subr.mxu1 %v2269_v5 }
  0xed   :  { %v1949_v35 = vpop.f32.mrf.mxu0 }
  0xee   :  { %v181_v36 = vadd.f32 %v1949_v35, %v1879_v33 }
  0xef   :  { %v175_v38 = vpop.f32.mrf.mxu0 }
  0xf0   :  { %v199_v39 = vcombine.high %v181_v36, %v2205_v0  ;;  %v206_v40 = vrot.slane %v181_v36, %v190_v34  ;;  %v176_v41 = vadd.f32 %v1879_v33, %v175_v38 }
  0xf2   :  { %v213_v42 = vrot.slane %v199_v39, %v190_v34  ;;  %v184_v43 = vcombine.high %v176_v41, %v2205_v0  ;;  %v191_v44 = vrot.slane %v176_v41, %v190_v34  ;;  %v2407_v39 = vld [vmem:[#allocation6 + $0x11] ss:$0 sm:$0xff] }
  0xf4   :  { %v198_v46 = vrot.slane %v184_v43, %v190_v34  ;;  %v214_v47 = vcombine.low %v191_v44, %v206_v40  ;;  %v215_v48 = vcombine.high %v191_v44, %v206_v40 }
  0xf6   :  { %v222_v49 = vrot.slane %v214_v47, %v221_v45  ;;  %v229_v50 = vrot.slane %v215_v48, %v221_v45  ;;  %v230_v51 = vcombine.low %v198_v46, %v213_v42  ;;  %v231_v52 = vcombine.high %v198_v46, %v213_v42  ;;  %1882 = vst.sshfl [vmem:[#allocation2] sm:$0x11 pattern:$0x73516240] %v214_v47 }
  0xf7   :  { %1883 = vst.sshfl [vmem:[#allocation2 + $0x4] sm:$0x11 pattern:$0x73516240] %v215_v48 }
  0xf8   :  { %v238_v53 = vrot.slane %v230_v51, %v221_v45  ;;  %v245_v54 = vrot.slane %v231_v52, %v221_v45  ;;  %v246_v55 = vcombine.high %v222_v49, %v2205_v0  ;;  %v247_v56 = vcombine.high %v229_v50, %v2205_v0  ;;  %1884 = vst.sshfl [vmem:[#allocation2 + $0x8] sm:$0x11 pattern:$0x73516240] %v230_v51 }
  0xf9   :  { %1885 = vst.sshfl [vmem:[#allocation2 + $0xc] sm:$0x11 pattern:$0x73516240] %v231_v52 }
  0xfa   :  { %v248_v57 = vcombine.high %v238_v53, %v2205_v0  ;;  %v249_v58 = vcombine.high %v245_v54, %v2205_v0  ;;  %251 = vst [vmem:[#allocation2 + $0x2] sm:$0x3] %v246_v55  ;;  %253 = vst [vmem:[#allocation2 + $0x6] sm:$0x3] %v247_v56 }
  0xfc   :  { %255 = vst [vmem:[#allocation2 + $0xa] sm:$0x3] %v248_v57  ;;  %257 = vst [vmem:[#allocation2 + $0xe] sm:$0x3] %v249_v58  ;;  %v1887_v57 = vld [vmem:[%s2744_s2 + $0x2] sm:$0x3] }
  0xfd   :  { %v344_v60 = vld [vmem:[#allocation2] sm:$0x3]  ;;  %s2211_s2 = smov 96  }
 0x101   :  { %v491_v38 = vld [vmem:[#allocation2 + $0x2] sm:$0x3] }
 0x15d   :  { %v340_v59 = vpop.f32.mrf.mxu1 }
 0x15e   :  { %v345_v61 = vadd.f32 %v344_v60, %v340_v59 }
 0x15f   :  { %v342_v62 = vpop.f32.mrf.mxu1 }
 0x160   :  { %v1889_v63 = vmul.f32 -1.442695, %v345_v61 }
 0x162   :  { %1978 = vpow2.f32 %v1889_v63 }
 0x16f   :  { %v1979_v1 = vpop.eup %1978 }
 0x170   :  { %v349_v2 = vadd.f32 1.0, %v1979_v1 }
 0x172   :  { %1980 = vrcp.f32 %v349_v2 }
 0x17f   :  { %v1981_v4 = vpop.eup %1980 }
 0x180   :  { %v352_v6 = vmul.f32 2.0, %v1981_v4 }
 0x182   :  { %v1890_v23 = vadd.f32 -1.0, %v352_v6 }
 0x184   :  { %v354_v25 = vsel %vm2377_vm5, %v1890_v23, %v1981_v4 }
 0x185   :  { %361 = vrot.lane.b32.xlu0 %v354_v25, %s2209_s1  ;;  %v359_v29 = vmul.f32 %v357_v26, %v354_v25 }
 0x1f7   :  { %v362_v27 = vpop.permute.xlu0 %361 }
 0x1f8   :  { %v364_v28 = vmul.f32 %v362_v27, %v354_v25  ;;  %v2210_v27 = vmov 1966171168  }
 0x1fa   :  { %366 = vrot.lane.b32.xlu1 %v364_v28, %s2206_s20  ;;  %v1482_v28 = vunpack.c.l.s4 %v2210_v27 }
 0x1fc   :  { %v1483_v26 = vunpack.c.0.s8 %v1482_v28 }
 0x26c   :  { %v367_v31 = vpop.permute.xlu1 %366 }
 0x26d   :  { %v369_v32 = vadd.f32 %v367_v31, %v359_v29  ;;  %v2431_v31 = vsub.s32 %v1483_v26, %v2367_v30 }
 0x26f   :  { %1982 = vtanh.f32 %v369_v32 }
 0x27c   :  { %v1983_v33 = vpop.eup %1982 }
 0x27d   :  { %372 = vrot.lane.b32.xlu0 %v1983_v33, %s2209_s1 }
 0x2ef   :  { %v373_v34 = vpop.permute.xlu0 %372 }
 0x2f0   :  { %v375_v35 = vmul.f32 %v373_v34, %v354_v25 }
 0x2f2   :  { %377 = vrot.lane.b32.xlu1 %v375_v35, %s2206_s20 }
 0x364   :  { %v378_v36 = vpop.permute.xlu1 %377 }
 0x365   :  { %v380_v37 = vsel %vm268_vm1, %v378_v36, %v2345_v24 }
 0x366   :  { %1891 = vmatmul.mubr.msk.f32.vlgmr.msra.gmra.mxu0 %vm270_vm2, %v380_v37 }
 0x367   :  { %687 = vmatpush1.msra.mxu0 %v2272_v7  ;;  %734 = vmatprep.mubr.f32.mxu0 %v2205_v0 }
 0x368   :  { %688 = vmatprep.subr.mxu0 %v2274_v8 }
 0x369   :  { %689 = vmatpush1.msra.mxu0 %v2277_v9 }
 0x36a   :  { %690 = vmatprep.subr.mxu0 %v2280_v10 }
 0x36b   :  { %691 = vmatpush1.msra.mxu0 %v2284_v11 }
 0x36c   :  { %692 = vmatprep.subr.mxu0 %v2287_v12 }
 0x36d   :  { %693 = vmatpush1.msra.mxu0 %v2291_v13 }
 0x36e   :  { %694 = vmatprep.subr.mxu0 %v2298_v15 }
 0x36f   :  { %695 = vmatpush1.msra.mxu0 %v2302_v16 }
 0x370   :  { %696 = vmatprep.subr.mxu0 %v2306_v17 }
 0x371   :  { %697 = vmatpush1.msra.mxu0 %v2310_v18 }
 0x372   :  { %698 = vmatprep.subr.mxu0 %v2314_v19 }
 0x373   :  { %699 = vmatpush1.msra.mxu0 %v2318_v20 }
 0x374   :  { %700 = vmatprep.subr.mxu0 %v2322_v21 }
 0x375   :  { %701 = vmatpush1.msra.mxu0 %v2326_v22 }
 0x376   :  { %964 = vmatprep.subr.mxu0 %v2269_v5 }
 0x426   :  { %v450_v24 = vpop.f32.mrf.mxu0 }
 0x427   :  { %v492_v40 = vadd.f32 %v491_v38, %v450_v24 }
 0x428   :  { %v452_v41 = vpop.f32.mrf.mxu0 }
 0x429   :  { %v1895_v42 = vmul.f32 -1.442695, %v492_v40  ;;  %v459_v43 = vadd.f32 %v2407_v39, %v452_v41 }
 0x42b   :  { %1984 = vpow2.f32 %v1895_v42  ;;  %v1893_v44 = vmul.f32 -1.442695, %v459_v43  ;;  %v630_v43 = vld [vmem:[#allocation2 + $0x4] sm:$0x3] }
 0x42d   :  { %1986 = vpow2.f32 %v1893_v44 }
 0x438   :  { %v1985_v45 = vpop.eup %1984 }
 0x439   :  { %v496_v46 = vadd.f32 1.0, %v1985_v45 }
 0x43a   :  { %v1987_v47 = vpop.eup %1986 }
 0x43b   :  { %1988 = vrcp.f32 %v496_v46  ;;  %v463_v48 = vadd.f32 1.0, %v1987_v47 }
 0x43d   :  { %1990 = vrcp.f32 %v463_v48 }
 0x448   :  { %v1989_v49 = vpop.eup %1988 }
 0x449   :  { %v499_v50 = vmul.f32 2.0, %v1989_v49 }
 0x44a   :  { %v1991_v51 = vpop.eup %1990 }
 0x44b   :  { %v1896_v52 = vadd.f32 -1.0, %v499_v50  ;;  %v466_v53 = vmul.f32 2.0, %v1991_v51 }
 0x44d   :  { %v501_v54 = vsel %vm2377_vm5, %v1896_v52, %v1989_v49  ;;  %v1894_v55 = vadd.f32 -1.0, %v466_v53 }
 0x44e   :  { %504 = vrot.lane.b32.xlu1 %v501_v54, %s2209_s1  ;;  %v502_v63 = vmul.f32 %v501_v54, %v369_v32 }
 0x44f   :  { %v468_v56 = vsel %vm2377_vm5, %v1894_v55, %v1991_v51 }
 0x450   :  { %475 = vrot.lane.b32.xlu0 %v468_v56, %s2209_s1 }
 0x454   :  { %470 = vrot.lane.b32.xlu0 %v1887_v57, %s2206_s20 }
 0x4c0   :  { %v505_v58 = vpop.permute.xlu1 %504 }
 0x4c1   :  { %v507_v59 = vmul.f32 %v505_v58, %v501_v54 }
 0x4c2   :  { %v476_v60 = vpop.permute.xlu0 %475 }
 0x4c3   :  { %v478_v61 = vmul.f32 %v476_v60, %v468_v56  ;;  %509 = vrot.lane.b32.xlu0 %v507_v59, %s2206_s20 }
 0x4c5   :  { %480 = vrot.lane.b32.xlu1 %v478_v61, %s2206_s20 }
 0x4c6   :  { %v471_v62 = vpop.permute.xlu0 %470 }
 0x4c7   :  { %v473_v2 = vmul.f32 %v471_v62, %v468_v56 }
 0x535   :  { %v510_v1 = vpop.permute.xlu0 %509 }
 0x536   :  { %v2422_v3 = vadd.f32 %v510_v1, %v502_v63 }
 0x537   :  { %v481_v4 = vpop.permute.xlu1 %480 }
 0x538   :  { %1992 = vtanh.f32 %v2422_v3  ;;  %v2425_v6 = vadd.f32 %v481_v4, %v473_v2 }
 0x53a   :  { %1994 = vtanh.f32 %v2425_v6 }
 0x545   :  { %v1993_v23 = vpop.eup %1992 }
 0x546   :  { %515 = vrot.lane.b32.xlu0 %v1993_v23, %s2209_s1 }
 0x547   :  { %v1995_v25 = vpop.eup %1994 }
 0x548   :  { %486 = vrot.lane.b32.xlu1 %v1995_v25, %s2209_s1 }
 0x5b8   :  { %v516_v29 = vpop.permute.xlu0 %515 }
 0x5b9   :  { %v518_v32 = vmul.f32 %v516_v29, %v501_v54 }
 0x5ba   :  { %v487_v33 = vpop.permute.xlu1 %486 }
 0x5bb   :  { %v489_v34 = vmul.f32 %v487_v33, %v468_v56  ;;  %520 = vrot.lane.b32.xlu1 %v518_v32, %s2206_s20 }
 0x5bd   :  { %v2435_v35 = vrot.slane %v489_v34, %v2431_v31  ;;  %524 = vrot.lane.b32.xlu0 %v489_v34, %s2209_s1 }
 0x5bf   :  { %v1488_v36 = vcombine.high %v2435_v35, %v2435_v35  ;;  %v1495_v37 = vrot.slane %v2435_v35, %v2431_v31 }
 0x5c1   :  { %v2443_v24 = vrot.slane %v1488_v36, %v2431_v31 }
 0x62d   :  { %v521_v38 = vpop.permute.xlu1 %520 }
 0x62f   :  { %v525_v40 = vpop.permute.xlu0 %524 }
 0x630   :  { %v527_v41 = vsel %vm268_vm1, %v521_v38, %v525_v40 }
 0x631   :  { %1897 = vmatmul.mubr.msk.f32.vlgmr.msra.gmra.mxu1 %vm270_vm2, %v527_v41 }
 0x632   :  { %826 = vmatpush1.msra.mxu1 %v2272_v7  ;;  %873 = vmatprep.mubr.f32.mxu1 %v2205_v0 }
 0x633   :  { %827 = vmatprep.subr.mxu1 %v2274_v8 }
 0x634   :  { %828 = vmatpush1.msra.mxu1 %v2277_v9 }
 0x635   :  { %829 = vmatprep.subr.mxu1 %v2280_v10 }
 0x636   :  { %830 = vmatpush1.msra.mxu1 %v2284_v11 }
 0x637   :  { %831 = vmatprep.subr.mxu1 %v2287_v12 }
 0x638   :  { %832 = vmatpush1.msra.mxu1 %v2291_v13 }
 0x639   :  { %833 = vmatprep.subr.mxu1 %v2298_v15 }
 0x63a   :  { %834 = vmatpush1.msra.mxu1 %v2302_v16 }
 0x63b   :  { %835 = vmatprep.subr.mxu1 %v2306_v17 }
 0x63c   :  { %836 = vmatpush1.msra.mxu1 %v2310_v18 }
 0x63d   :  { %837 = vmatprep.subr.mxu1 %v2314_v19 }
 0x63e   :  { %838 = vmatpush1.msra.mxu1 %v2318_v20 }
 0x63f   :  { %839 = vmatprep.subr.mxu1 %v2322_v21 }
 0x640   :  { %840 = vmatpush1.msra.mxu1 %v2326_v22 }
 0x641   :  { %1103 = vmatprep.subr.mxu1 %v2269_v5 }
 0x6f1   :  { %v597_v42 = vpop.f32.mrf.mxu1 }
 0x6f2   :  { %v631_v44 = vadd.f32 %v630_v43, %v597_v42 }
 0x6f3   :  { %v599_v45 = vpop.f32.mrf.mxu1 }
 0x6f4   :  { %v1900_v46 = vmul.f32 -1.442695, %v631_v44  ;;  %v602_v47 = vadd.f32 %v2407_v39, %v599_v45 }
 0x6f6   :  { %1996 = vpow2.f32 %v1900_v46  ;;  %v1898_v48 = vmul.f32 -1.442695, %v602_v47 }
 0x6f8   :  { %1998 = vpow2.f32 %v1898_v48 }
 0x703   :  { %v1997_v49 = vpop.eup %1996 }
 0x704   :  { %v635_v50 = vadd.f32 1.0, %v1997_v49 }
 0x705   :  { %v1999_v51 = vpop.eup %1998 }
 0x706   :  { %2000 = vrcp.f32 %v635_v50  ;;  %v606_v52 = vadd.f32 1.0, %v1999_v51 }
 0x708   :  { %2002 = vrcp.f32 %v606_v52 }
 0x713   :  { %v2001_v53 = vpop.eup %2000 }
 0x714   :  { %v638_v54 = vmul.f32 2.0, %v2001_v53 }
 0x715   :  { %v2003_v55 = vpop.eup %2002 }
 0x716   :  { %v1901_v56 = vadd.f32 -1.0, %v638_v54  ;;  %v609_v57 = vmul.f32 2.0, %v2003_v55 }
 0x718   :  { %v640_v58 = vsel %vm2377_vm5, %v1901_v56, %v2001_v53  ;;  %v1899_v59 = vadd.f32 -1.0, %v609_v57 }
 0x719   :  { %643 = vrot.lane.b32.xlu0 %v640_v58, %s2209_s1  ;;  %v641_v2 = vmul.f32 %v640_v58, %v2422_v3 }
 0x71a   :  { %v611_v60 = vsel %vm2377_vm5, %v1899_v59, %v2003_v55 }
 0x71b   :  { %614 = vrot.lane.b32.xlu1 %v611_v60, %s2209_s1  ;;  %v612_v25 = vmul.f32 %v611_v60, %v2425_v6  ;;  %v2485_v6 = vsub.s32 0, %v2367_v30 }
 0x78b   :  { %v644_v61 = vpop.permute.xlu0 %643 }
 0x78c   :  { %v646_v62 = vmul.f32 %v644_v61, %v640_v58 }
 0x78d   :  { %v615_v63 = vpop.permute.xlu1 %614 }
 0x78e   :  { %v617_v1 = vmul.f32 %v615_v63, %v611_v60  ;;  %648 = vrot.lane.b32.xlu0 %v646_v62, %s2206_s20 }
 0x790   :  { %619 = vrot.lane.b32.xlu1 %v617_v1, %s2206_s20 }
 0x800   :  { %v649_v4 = vpop.permute.xlu0 %648 }
 0x801   :  { %v2474_v23 = vadd.f32 %v649_v4, %v641_v2 }
 0x802   :  { %v620_v27 = vpop.permute.xlu1 %619 }
 0x803   :  { %2004 = vtanh.f32 %v2474_v23  ;;  %v2478_v28 = vadd.f32 %v620_v27, %v612_v25 }
 0x805   :  { %2006 = vtanh.f32 %v2478_v28 }
 0x810   :  { %v2005_v26 = vpop.eup %2004 }
 0x811   :  { %654 = vrot.lane.b32.xlu0 %v2005_v26, %s2209_s1 }
 0x812   :  { %v2007_v29 = vpop.eup %2006 }
 0x813   :  { %625 = vrot.lane.b32.xlu1 %v2007_v29, %s2209_s1 }
 0x883   :  { %v655_v32 = vpop.permute.xlu0 %654 }
 0x884   :  { %v657_v3 = vmul.f32 %v655_v32, %v640_v58 }
 0x885   :  { %v626_v33 = vpop.permute.xlu1 %625 }
 0x886   :  { %v628_v34 = vmul.f32 %v626_v33, %v611_v60  ;;  %659 = vrot.lane.b32.xlu1 %v657_v3, %s2206_s20 }
 0x888   :  { %v1511_v36 = vrot.slane %v628_v34, %v2431_v31  ;;  %663 = vrot.lane.b32.xlu0 %v628_v34, %s2209_s1 }
 0x88a   :  { %v1512_v38 = vcombine.high %v1511_v36, %v1511_v36  ;;  %v1519_v40 = vrot.slane %v1511_v36, %v2431_v31 }
 0x88c   :  { %v1526_v41 = vrot.slane %v1512_v38, %v2431_v31  ;;  %v1662_v42 = vrot.slane %v1519_v40, %v2485_v6 }
 0x88e   :  { %v1666_v43 = vrot.slane %v1526_v41, %v2485_v6  ;;  %v2496_v44 = vsel %vm1729_vm6, %v1495_v37, %v1662_v42  ;;  %v769_v37 = vld [vmem:[#allocation2 + $0x6] sm:$0x3] }
 0x890   :  { %v2499_v30 = vsel %vm1729_vm6, %v2443_v24, %v1666_v43 }
 0x8f8   :  { %v660_v45 = vpop.permute.xlu1 %659 }
 0x8fa   :  { %v664_v46 = vpop.permute.xlu0 %663 }
 0x8fb   :  { %v666_v47 = vsel %vm268_vm1, %v660_v45, %v664_v46 }
 0x8fc   :  { %1902 = vmatmul.mubr.msk.f32.vlgmr.msra.gmra.mxu0 %vm270_vm2, %v666_v47 }
 0x8fd   :  { %965 = vmatpush1.msra.mxu0 %v2272_v7  ;;  %1012 = vmatprep.mubr.f32.mxu0 %v2205_v0 }
 0x8fe   :  { %966 = vmatprep.subr.mxu0 %v2274_v8 }
 0x8ff   :  { %967 = vmatpush1.msra.mxu0 %v2277_v9 }
 0x900   :  { %968 = vmatprep.subr.mxu0 %v2280_v10 }
 0x901   :  { %969 = vmatpush1.msra.mxu0 %v2284_v11 }
 0x902   :  { %970 = vmatprep.subr.mxu0 %v2287_v12 }
 0x903   :  { %971 = vmatpush1.msra.mxu0 %v2291_v13 }
 0x904   :  { %972 = vmatprep.subr.mxu0 %v2298_v15 }
 0x905   :  { %973 = vmatpush1.msra.mxu0 %v2302_v16 }
 0x906   :  { %974 = vmatprep.subr.mxu0 %v2306_v17 }
 0x907   :  { %975 = vmatpush1.msra.mxu0 %v2310_v18 }
 0x908   :  { %976 = vmatprep.subr.mxu0 %v2314_v19 }
 0x909   :  { %977 = vmatpush1.msra.mxu0 %v2318_v20 }
 0x90a   :  { %978 = vmatprep.subr.mxu0 %v2322_v21 }
 0x90b   :  { %979 = vmatpush1.msra.mxu0 %v2326_v22 }
 0x90c   :  { %1242 = vmatprep.subr.mxu0 %v2269_v5 }
 0x9bc   :  { %v736_v35 = vpop.f32.mrf.mxu0 }
 0x9bd   :  { %v770_v24 = vadd.f32 %v769_v37, %v736_v35 }
 0x9be   :  { %v738_v48 = vpop.f32.mrf.mxu0 }
 0x9bf   :  { %v1905_v49 = vmul.f32 -1.442695, %v770_v24  ;;  %v741_v50 = vadd.f32 %v2407_v39, %v738_v48 }
 0x9c1   :  { %2008 = vpow2.f32 %v1905_v49  ;;  %v1903_v51 = vmul.f32 -1.442695, %v741_v50 }
 0x9c3   :  { %2010 = vpow2.f32 %v1903_v51 }
 0x9ce   :  { %v2009_v52 = vpop.eup %2008 }
 0x9cf   :  { %v774_v53 = vadd.f32 1.0, %v2009_v52 }
 0x9d0   :  { %v2011_v54 = vpop.eup %2010 }
 0x9d1   :  { %2012 = vrcp.f32 %v774_v53  ;;  %v745_v55 = vadd.f32 1.0, %v2011_v54 }
 0x9d3   :  { %2014 = vrcp.f32 %v745_v55 }
 0x9de   :  { %v2013_v56 = vpop.eup %2012 }
 0x9df   :  { %v777_v57 = vmul.f32 2.0, %v2013_v56 }
 0x9e0   :  { %v2015_v58 = vpop.eup %2014 }
 0x9e1   :  { %v1906_v59 = vadd.f32 -1.0, %v777_v57  ;;  %v748_v60 = vmul.f32 2.0, %v2015_v58 }
 0x9e3   :  { %v779_v61 = vsel %vm2377_vm5, %v1906_v59, %v2013_v56  ;;  %v1904_v62 = vadd.f32 -1.0, %v748_v60 }
 0x9e4   :  { %782 = vrot.lane.b32.xlu0 %v779_v61, %s2209_s1  ;;  %v780_v27 = vmul.f32 %v779_v61, %v2474_v23 }
 0x9e5   :  { %v750_v63 = vsel %vm2377_vm5, %v1904_v62, %v2015_v58 }
 0x9e6   :  { %753 = vrot.lane.b32.xlu1 %v750_v63, %s2209_s1  ;;  %v751_v32 = vmul.f32 %v750_v63, %v2478_v28 }
 0xa56   :  { %v783_v1 = vpop.permute.xlu0 %782 }
 0xa57   :  { %v785_v2 = vmul.f32 %v783_v1, %v779_v61 }
 0xa58   :  { %v754_v4 = vpop.permute.xlu1 %753 }
 0xa59   :  { %v756_v25 = vmul.f32 %v754_v4, %v750_v63  ;;  %787 = vrot.lane.b32.xlu0 %v785_v2, %s2206_s20 }
 0xa5b   :  { %758 = vrot.lane.b32.xlu1 %v756_v25, %s2206_s20 }
 0xacb   :  { %v788_v26 = vpop.permute.xlu0 %787 }
 0xacc   :  { %v2530_v29 = vadd.f32 %v788_v26, %v780_v27 }
 0xacd   :  { %v759_v3 = vpop.permute.xlu1 %758 }
 0xace   :  { %2016 = vtanh.f32 %v2530_v29  ;;  %v2534_v33 = vadd.f32 %v759_v3, %v751_v32 }
 0xad0   :  { %2018 = vtanh.f32 %v2534_v33 }
 0xadb   :  { %v2017_v34 = vpop.eup %2016 }
 0xadc   :  { %793 = vrot.lane.b32.xlu0 %v2017_v34, %s2209_s1 }
 0xadd   :  { %v2019_v36 = vpop.eup %2018 }
 0xade   :  { %764 = vrot.lane.b32.xlu1 %v2019_v36, %s2209_s1 }
 0xb4e   :  { %v794_v38 = vpop.permute.xlu0 %793 }
 0xb4f   :  { %v796_v23 = vmul.f32 %v794_v38, %v779_v61 }
 0xb50   :  { %v765_v40 = vpop.permute.xlu1 %764 }
 0xb51   :  { %v767_v41 = vmul.f32 %v765_v40, %v750_v63  ;;  %798 = vrot.lane.b32.xlu1 %v796_v23, %s2206_s20 }
 0xb53   :  { %v1533_v28 = vrot.slane %v767_v41, %v2431_v31  ;;  %802 = vrot.lane.b32.xlu0 %v767_v41, %s2209_s1 }
 0xb55   :  { %v1534_v42 = vcombine.high %v1533_v28, %v1533_v28  ;;  %v1541_v43 = vrot.slane %v1533_v28, %v2431_v31 }
 0xb57   :  { %v1548_v45 = vrot.slane %v1534_v42, %v2431_v31  ;;  %v1672_v46 = vrot.slane %v1541_v43, %v2485_v6 }
 0xb59   :  { %v1676_v47 = vrot.slane %v1548_v45, %v2485_v6  ;;  %v2547_v35 = vsel %vm1732_vm7, %v2496_v44, %v1672_v46 }
 0xb5b   :  { %v2550_v37 = vsel %vm1732_vm7, %v2499_v30, %v1676_v47  ;;  %v908_v30 = vld [vmem:[#allocation2 + $0x8] sm:$0x3] }
 0xbc3   :  { %v799_v24 = vpop.permute.xlu1 %798 }
 0xbc5   :  { %v803_v48 = vpop.permute.xlu0 %802 }
 0xbc6   :  { %v805_v49 = vsel %vm268_vm1, %v799_v24, %v803_v48 }
 0xbc7   :  { %1907 = vmatmul.mubr.msk.f32.vlgmr.msra.gmra.mxu1 %vm270_vm2, %v805_v49 }
 0xbc8   :  { %1104 = vmatpush1.msra.mxu1 %v2272_v7  ;;  %1151 = vmatprep.mubr.f32.mxu1 %v2205_v0 }
 0xbc9   :  { %1105 = vmatprep.subr.mxu1 %v2274_v8 }
 0xbca   :  { %1106 = vmatpush1.msra.mxu1 %v2277_v9 }
 0xbcb   :  { %1107 = vmatprep.subr.mxu1 %v2280_v10 }
 0xbcc   :  { %1108 = vmatpush1.msra.mxu1 %v2284_v11 }
 0xbcd   :  { %1109 = vmatprep.subr.mxu1 %v2287_v12 }
 0xbce   :  { %1110 = vmatpush1.msra.mxu1 %v2291_v13 }
 0xbcf   :  { %1111 = vmatprep.subr.mxu1 %v2298_v15 }
 0xbd0   :  { %1112 = vmatpush1.msra.mxu1 %v2302_v16 }
 0xbd1   :  { %1113 = vmatprep.subr.mxu1 %v2306_v17 }
 0xbd2   :  { %1114 = vmatpush1.msra.mxu1 %v2310_v18 }
 0xbd3   :  { %1115 = vmatprep.subr.mxu1 %v2314_v19 }
 0xbd4   :  { %1116 = vmatpush1.msra.mxu1 %v2318_v20 }
 0xbd5   :  { %1117 = vmatprep.subr.mxu1 %v2322_v21 }
 0xbd6   :  { %1118 = vmatpush1.msra.mxu1 %v2326_v22 }
 0xbd7   :  { %1381 = vmatprep.subr.mxu1 %v2269_v5 }
 0xc87   :  { %v875_v44 = vpop.f32.mrf.mxu1 }
 0xc88   :  { %v909_v50 = vadd.f32 %v908_v30, %v875_v44 }
 0xc89   :  { %v877_v51 = vpop.f32.mrf.mxu1 }
 0xc8a   :  { %v1910_v52 = vmul.f32 -1.442695, %v909_v50  ;;  %v880_v53 = vadd.f32 %v2407_v39, %v877_v51 }
 0xc8c   :  { %2020 = vpow2.f32 %v1910_v52  ;;  %v1908_v54 = vmul.f32 -1.442695, %v880_v53 }
 0xc8e   :  { %2022 = vpow2.f32 %v1908_v54 }
 0xc99   :  { %v2021_v55 = vpop.eup %2020 }
 0xc9a   :  { %v913_v56 = vadd.f32 1.0, %v2021_v55 }
 0xc9b   :  { %v2023_v57 = vpop.eup %2022 }
 0xc9c   :  { %2024 = vrcp.f32 %v913_v56  ;;  %v884_v58 = vadd.f32 1.0, %v2023_v57 }
 0xc9e   :  { %2026 = vrcp.f32 %v884_v58 }
 0xca9   :  { %v2025_v59 = vpop.eup %2024 }
 0xcaa   :  { %v916_v60 = vmul.f32 2.0, %v2025_v59 }
 0xcab   :  { %v2027_v61 = vpop.eup %2026 }
 0xcac   :  { %v1911_v5 = vadd.f32 -1.0, %v916_v60  ;;  %v887_v62 = vmul.f32 2.0, %v2027_v61 }
 0xcae   :  { %v918_v63 = vsel %vm2377_vm5, %v1911_v5, %v2025_v59  ;;  %v1909_v1 = vadd.f32 -1.0, %v887_v62 }
 0xcaf   :  { %921 = vrot.lane.b32.xlu0 %v918_v63, %s2209_s1  ;;  %v919_v32 = vmul.f32 %v918_v63, %v2530_v29 }
 0xcb0   :  { %v889_v2 = vsel %vm2377_vm5, %v1909_v1, %v2027_v61 }
 0xcb1   :  { %892 = vrot.lane.b32.xlu1 %v889_v2, %s2209_s1  ;;  %v890_v36 = vmul.f32 %v889_v2, %v2534_v33 }
 0xd21   :  { %v922_v4 = vpop.permute.xlu0 %921 }
 0xd22   :  { %v924_v25 = vmul.f32 %v922_v4, %v918_v63 }
 0xd23   :  { %v893_v27 = vpop.permute.xlu1 %892 }
 0xd24   :  { %v895_v26 = vmul.f32 %v893_v27, %v889_v2  ;;  %926 = vrot.lane.b32.xlu0 %v924_v25, %s2206_s20 }
 0xd26   :  { %897 = vrot.lane.b32.xlu1 %v895_v26, %s2206_s20 }
 0xd96   :  { %v927_v3 = vpop.permute.xlu0 %926 }
 0xd97   :  { %v2581_v34 = vadd.f32 %v927_v3, %v919_v32 }
 0xd98   :  { %v898_v38 = vpop.permute.xlu1 %897 }
 0xd99   :  { %2028 = vtanh.f32 %v2581_v34  ;;  %v2585_v23 = vadd.f32 %v898_v38, %v890_v36 }
 0xd9b   :  { %2030 = vtanh.f32 %v2585_v23 }
 0xda6   :  { %v2029_v40 = vpop.eup %2028 }
 0xda7   :  { %932 = vrot.lane.b32.xlu0 %v2029_v40, %s2209_s1 }
 0xda8   :  { %v2031_v41 = vpop.eup %2030 }
 0xda9   :  { %903 = vrot.lane.b32.xlu1 %v2031_v41, %s2209_s1 }
 0xe19   :  { %v933_v28 = vpop.permute.xlu0 %932 }
 0xe1a   :  { %v935_v29 = vmul.f32 %v933_v28, %v918_v63 }
 0xe1b   :  { %v904_v42 = vpop.permute.xlu1 %903 }
 0xe1c   :  { %v906_v43 = vmul.f32 %v904_v42, %v889_v2  ;;  %937 = vrot.lane.b32.xlu1 %v935_v29, %s2206_s20  ;;  %v2074_v42 = vld [vmem:[#allocation8 + $0x70] sm:$0xff] }
 0xe1e   :  { %v1555_v33 = vrot.slane %v906_v43, %v2431_v31  ;;  %941 = vrot.lane.b32.xlu0 %v906_v43, %s2209_s1  ;;  %v2075_v43 = vld [vmem:[#allocation8 + $0x68] sm:$0xff] }
 0xe20   :  { %v1556_v45 = vcombine.high %v1555_v33, %v1555_v33  ;;  %v1563_v46 = vrot.slane %v1555_v33, %v2431_v31  ;;  %v2076_v33 = vld [vmem:[#allocation8 + $0x60] sm:$0xff] }
 0xe22   :  { %v1570_v47 = vrot.slane %v1556_v45, %v2431_v31  ;;  %v1682_v24 = vrot.slane %v1563_v46, %v2485_v6  ;;  %v2077_v45 = vld [vmem:[#allocation8 + $0x58] sm:$0xff]  ;;  %v2078_v46 = vld [vmem:[#allocation8 + $0x50] sm:$0xff] }
 0xe24   :  { %v1686_v48 = vrot.slane %v1570_v47, %v2485_v6  ;;  %v2598_v49 = vsel %vm1735_vm8, %v2547_v35, %v1682_v24  ;;  %v2079_v47 = vld [vmem:[#allocation8 + $0x48] sm:$0xff]  ;;  %v2080_v24 = vld [vmem:[#allocation8 + $0x40] sm:$0xff] }
 0xe26   :  { %v2601_v44 = vsel %vm1735_vm8, %v2550_v37, %v1686_v48  ;;  %v2081_v48 = vld [vmem:[#allocation8 + $0x38] sm:$0xff] }
 0xe8e   :  { %v938_v30 = vpop.permute.xlu1 %937 }
 0xe90   :  { %v942_v50 = vpop.permute.xlu0 %941 }
 0xe91   :  { %v944_v51 = vsel %vm268_vm1, %v938_v30, %v942_v50  ;;  %v2084_v30 = vld [vmem:[#allocation8 + $0x20] sm:$0xff]  ;;  %v2086_v50 = vld [vmem:[#allocation8 + $0x10] sm:$0xff] }
 0xe92   :  { %1912 = vmatmul.mubr.msk.f32.vlgmr.msra.gmra.mxu0 %vm270_vm2, %v944_v51  ;;  %v2087_v51 = vld [vmem:[#allocation8 + $0x8] sm:$0xff] }
 0xe93   :  { %1243 = vmatpush1.msra.mxu0 %v2272_v7  ;;  %1290 = vmatprep.mubr.f32.mxu0 %v2205_v0 }
 0xe94   :  { %1244 = vmatprep.subr.mxu0 %v2274_v8  ;;  %v1047_v8 = vld [vmem:[#allocation2 + $0xa] sm:$0x3] }
 0xe95   :  { %1245 = vmatpush1.msra.mxu0 %v2277_v9 }
 0xe96   :  { %1246 = vmatprep.subr.mxu0 %v2280_v10 }
 0xe97   :  { %1247 = vmatpush1.msra.mxu0 %v2284_v11 }
 0xe98   :  { %1248 = vmatprep.subr.mxu0 %v2287_v12 }
 0xe99   :  { %1249 = vmatpush1.msra.mxu0 %v2291_v13 }
 0xe9a   :  { %1250 = vmatprep.subr.mxu0 %v2298_v15 }
 0xe9b   :  { %1251 = vmatpush1.msra.mxu0 %v2302_v16 }
 0xe9c   :  { %1252 = vmatprep.subr.mxu0 %v2306_v17 }
 0xe9d   :  { %1253 = vmatpush1.msra.mxu0 %v2310_v18 }
 0xe9e   :  { %1254 = vmatprep.subr.mxu0 %v2314_v19 }
 0xe9f   :  { %1255 = vmatpush1.msra.mxu0 %v2318_v20 }
 0xea0   :  { %1256 = vmatprep.subr.mxu0 %v2322_v21 }
 0xea1   :  { %1257 = vmatpush1.msra.mxu0 %v2326_v22 }
 0xf52   :  { %v1014_v7 = vpop.f32.mrf.mxu0 }
 0xf53   :  { %v1048_v9 = vadd.f32 %v1047_v8, %v1014_v7  ;;  %v2088_v7 = vld [vmem:[#allocation8] sm:$0xff] }
 0xf54   :  { %v1016_v10 = vpop.f32.mrf.mxu0 }
 0xf55   :  { %v1915_v11 = vmul.f32 -1.442695, %v1048_v9  ;;  %v1019_v12 = vadd.f32 %v2407_v39, %v1016_v10  ;;  %v1186_v9 = vld [vmem:[#allocation2 + $0xc] sm:$0x3] }
 0xf57   :  { %2032 = vpow2.f32 %v1915_v11  ;;  %v1913_v13 = vmul.f32 -1.442695, %v1019_v12 }
 0xf59   :  { %2034 = vpow2.f32 %v1913_v13 }
 0xf64   :  { %v2033_v15 = vpop.eup %2032 }
 0xf65   :  { %v1052_v16 = vadd.f32 1.0, %v2033_v15 }
 0xf66   :  { %v2035_v17 = vpop.eup %2034 }
 0xf67   :  { %2036 = vrcp.f32 %v1052_v16  ;;  %v1023_v18 = vadd.f32 1.0, %v2035_v17 }
 0xf69   :  { %2038 = vrcp.f32 %v1023_v18 }
 0xf74   :  { %v2037_v19 = vpop.eup %2036 }
 0xf75   :  { %v1055_v20 = vmul.f32 2.0, %v2037_v19 }
 0xf76   :  { %v2039_v21 = vpop.eup %2038 }
 0xf77   :  { %v1916_v22 = vadd.f32 -1.0, %v1055_v20  ;;  %v1026_v35 = vmul.f32 2.0, %v2039_v21 }
 0xf79   :  { %v1057_v37 = vsel %vm2377_vm5, %v1916_v22, %v2037_v19  ;;  %v1914_v52 = vadd.f32 -1.0, %v1026_v35 }
 0xf7a   :  { %1060 = vrot.lane.b32.xlu0 %v1057_v37, %s2209_s1  ;;  %v1058_v58 = vmul.f32 %v1057_v37, %v2581_v34 }
 0xf7b   :  { %v1028_v53 = vsel %vm2377_vm5, %v1914_v52, %v2039_v21 }
 0xf7c   :  { %1031 = vrot.lane.b32.xlu1 %v1028_v53, %s2209_s1  ;;  %v1029_v61 = vmul.f32 %v1028_v53, %v2585_v23 }
 0xfec   :  { %v1061_v54 = vpop.permute.xlu0 %1060 }
 0xfed   :  { %v1063_v55 = vmul.f32 %v1061_v54, %v1057_v37 }
 0xfee   :  { %v1032_v56 = vpop.permute.xlu1 %1031 }
 0xfef   :  { %v1034_v57 = vmul.f32 %v1032_v56, %v1028_v53  ;;  %1065 = vrot.lane.b32.xlu0 %v1063_v55, %s2206_s20 }
 0xff1   :  { %1036 = vrot.lane.b32.xlu1 %v1034_v57, %s2206_s20 }
0x1061   :  { %v1066_v59 = vpop.permute.xlu0 %1065 }
0x1062   :  { %v2631_v60 = vadd.f32 %v1066_v59, %v1058_v58 }
0x1063   :  { %v1037_v5 = vpop.permute.xlu1 %1036 }
0x1064   :  { %2040 = vtanh.f32 %v2631_v60  ;;  %v2635_v62 = vadd.f32 %v1037_v5, %v1029_v61 }
0x1066   :  { %2042 = vtanh.f32 %v2635_v62 }
0x1071   :  { %v2041_v63 = vpop.eup %2040 }
0x1072   :  { %1071 = vrot.lane.b32.xlu0 %v2041_v63, %s2209_s1 }
0x1073   :  { %v2043_v1 = vpop.eup %2042 }
0x1074   :  { %1042 = vrot.lane.b32.xlu1 %v2043_v1, %s2209_s1 }
0x10e4   :  { %v1072_v2 = vpop.permute.xlu0 %1071 }
0x10e5   :  { %v1074_v4 = vmul.f32 %v1072_v2, %v1057_v37 }
0x10e6   :  { %v1043_v25 = vpop.permute.xlu1 %1042 }
0x10e7   :  { %v1045_v27 = vmul.f32 %v1043_v25, %v1028_v53  ;;  %1076 = vrot.lane.b32.xlu1 %v1074_v4, %s2206_s20 }
0x10e9   :  { %v1577_v26 = vrot.slane %v1045_v27, %v2431_v31  ;;  %1080 = vrot.lane.b32.xlu0 %v1045_v27, %s2209_s1 }
0x10eb   :  { %v1578_v32 = vcombine.high %v1577_v26, %v1577_v26  ;;  %v1585_v3 = vrot.slane %v1577_v26, %v2431_v31 }
0x10ed   :  { %v1592_v34 = vrot.slane %v1578_v32, %v2431_v31  ;;  %v1692_v36 = vrot.slane %v1585_v3, %v2485_v6 }
0x10ef   :  { %v1696_v38 = vrot.slane %v1592_v34, %v2485_v6  ;;  %v2648_v23 = vsel %vm1738_vm9, %v2598_v49, %v1692_v36  ;;  %v2082_v49 = vld [vmem:[#allocation8 + $0x30] sm:$0xff] }
0x10f1   :  { %v2651_v40 = vsel %vm1738_vm9, %v2601_v44, %v1696_v38  ;;  %v2083_v44 = vld [vmem:[#allocation8 + $0x28] sm:$0xff] }
0x1159   :  { %v1077_v41 = vpop.permute.xlu1 %1076 }
0x115b   :  { %v1081_v28 = vpop.permute.xlu0 %1080 }
0x115c   :  { %v1083_v29 = vsel %vm268_vm1, %v1077_v41, %v1081_v28 }
0x115d   :  { %1917 = vmatmul.mubr.msk.f32.vlgmr.msra.gmra.mxu1 %vm270_vm2, %v1083_v29 }
0x115e   :  { %1382 = vmatpush1.msra.mxu1 %v2074_v42  ;;  %1429 = vmatprep.mubr.f32.mxu1 %v2205_v0  ;;  %v2085_v0 = vld [vmem:[#allocation8 + $0x18] sm:$0xff] }
0x115f   :  { %1383 = vmatprep.subr.mxu1 %v2075_v43 }
0x1160   :  { %1384 = vmatpush1.msra.mxu1 %v2076_v33 }
0x1161   :  { %1385 = vmatprep.subr.mxu1 %v2077_v45 }
0x1162   :  { %1386 = vmatpush1.msra.mxu1 %v2078_v46  ;;  %v1325_v46 = vld [vmem:[#allocation2 + $0xe] sm:$0x3] }
0x1163   :  { %1387 = vmatprep.subr.mxu1 %v2079_v47 }
0x1164   :  { %1388 = vmatpush1.msra.mxu1 %v2080_v24 }
0x1165   :  { %1389 = vmatprep.subr.mxu1 %v2081_v48 }
0x1166   :  { %1390 = vmatpush1.msra.mxu1 %v2082_v49 }
0x1167   :  { %1391 = vmatprep.subr.mxu1 %v2083_v44 }
0x1168   :  { %1392 = vmatpush1.msra.mxu1 %v2084_v30 }
0x1169   :  { %1393 = vmatprep.subr.mxu1 %v2085_v0 }
0x116a   :  { %1394 = vmatpush1.msra.mxu1 %v2086_v50 }
0x116b   :  { %1395 = vmatprep.subr.mxu1 %v2087_v51 }
0x116c   :  { %1396 = vmatpush1.msra.mxu1 %v2088_v7 }
0x121d   :  { %v1153_v8 = vpop.f32.mrf.mxu1 }
0x121e   :  { %v1187_v10 = vadd.f32 %v1186_v9, %v1153_v8 }
0x121f   :  { %v1155_v11 = vpop.f32.mrf.mxu1 }
0x1220   :  { %v1920_v12 = vmul.f32 -1.442695, %v1187_v10  ;;  %v1158_v13 = vadd.f32 %v2407_v39, %v1155_v11 }
0x1222   :  { %2044 = vpow2.f32 %v1920_v12  ;;  %v1918_v15 = vmul.f32 -1.442695, %v1158_v13 }
0x1224   :  { %2046 = vpow2.f32 %v1918_v15 }
0x122f   :  { %v2045_v16 = vpop.eup %2044 }
0x1230   :  { %v1191_v17 = vadd.f32 1.0, %v2045_v16 }
0x1231   :  { %v2047_v18 = vpop.eup %2046 }
0x1232   :  { %2048 = vrcp.f32 %v1191_v17  ;;  %v1162_v19 = vadd.f32 1.0, %v2047_v18 }
0x1234   :  { %2050 = vrcp.f32 %v1162_v19 }
0x123f   :  { %v2049_v20 = vpop.eup %2048 }
0x1240   :  { %v1194_v21 = vmul.f32 2.0, %v2049_v20 }
0x1241   :  { %v2051_v22 = vpop.eup %2050 }
0x1242   :  { %v1921_v35 = vadd.f32 -1.0, %v1194_v21  ;;  %v1165_v37 = vmul.f32 2.0, %v2051_v22 }
0x1244   :  { %v1196_v52 = vsel %vm2377_vm5, %v1921_v35, %v2049_v20  ;;  %v1919_v53 = vadd.f32 -1.0, %v1165_v37 }
0x1245   :  { %1199 = vrot.lane.b32.xlu0 %v1196_v52, %s2209_s1  ;;  %v1197_v59 = vmul.f32 %v1196_v52, %v2631_v60 }
0x1246   :  { %v1167_v54 = vsel %vm2377_vm5, %v1919_v53, %v2051_v22 }
0x1247   :  { %1170 = vrot.lane.b32.xlu1 %v1167_v54, %s2209_s1  ;;  %v1168_v63 = vmul.f32 %v1167_v54, %v2635_v62 }
0x12b7   :  { %v1200_v55 = vpop.permute.xlu0 %1199 }
0x12b8   :  { %v1202_v56 = vmul.f32 %v1200_v55, %v1196_v52 }
0x12b9   :  { %v1171_v57 = vpop.permute.xlu1 %1170 }
0x12ba   :  { %v1173_v58 = vmul.f32 %v1171_v57, %v1167_v54  ;;  %1204 = vrot.lane.b32.xlu0 %v1202_v56, %s2206_s20 }
0x12bc   :  { %1175 = vrot.lane.b32.xlu1 %v1173_v58, %s2206_s20 }
0x132c   :  { %v1205_v61 = vpop.permute.xlu0 %1204 }
0x132d   :  { %v1207_v5 = vadd.f32 %v1205_v61, %v1197_v59 }
0x132e   :  { %v1176_v1 = vpop.permute.xlu1 %1175 }
0x132f   :  { %2052 = vtanh.f32 %v1207_v5  ;;  %v1178_v2 = vadd.f32 %v1176_v1, %v1168_v63 }
0x1331   :  { %2054 = vtanh.f32 %v1178_v2 }
0x133c   :  { %v2053_v4 = vpop.eup %2052 }
0x133d   :  { %1210 = vrot.lane.b32.xlu0 %v2053_v4, %s2209_s1 }
0x133e   :  { %v2055_v25 = vpop.eup %2054 }
0x133f   :  { %1181 = vrot.lane.b32.xlu1 %v2055_v25, %s2209_s1 }
0x13af   :  { %v1211_v27 = vpop.permute.xlu0 %1210 }
0x13b0   :  { %v1213_v26 = vmul.f32 %v1211_v27, %v1196_v52 }
0x13b1   :  { %v1182_v32 = vpop.permute.xlu1 %1181 }
0x13b2   :  { %v1184_v3 = vmul.f32 %v1182_v32, %v1167_v54  ;;  %1215 = vrot.lane.b32.xlu1 %v1213_v26, %s2206_s20  ;;  %v2089_v32 = vld [vmem:[#allocation6 + $0x11] ss:$0 sm:$0xff] }
0x13b4   :  { %v1599_v60 = vrot.slane %v1184_v3, %v2431_v31  ;;  %1219 = vrot.lane.b32.xlu0 %v1184_v3, %s2209_s1 }
0x13b6   :  { %v1600_v62 = vcombine.high %v1599_v60, %v1599_v60  ;;  %v1607_v34 = vrot.slane %v1599_v60, %v2431_v31 }
0x13b8   :  { %v1614_v36 = vrot.slane %v1600_v62, %v2431_v31  ;;  %v1702_v38 = vrot.slane %v1607_v34, %v2485_v6 }
0x13ba   :  { %v1706_v41 = vrot.slane %v1614_v36, %v2485_v6  ;;  %v1742_v28 = vsel %vm1741_vm10, %v2648_v23, %v1702_v38 }
0x13bc   :  { %v2678_v29 = vsel %vm1741_vm10, %v2651_v40, %v1706_v41 }
0x1424   :  { %v1216_v42 = vpop.permute.xlu1 %1215 }
0x1426   :  { %v1220_v43 = vpop.permute.xlu0 %1219 }
0x1427   :  { %v1222_v33 = vsel %vm268_vm1, %v1216_v42, %v1220_v43 }
0x1428   :  { %1922 = vmatmul.mubr.msk.f32.vlgmr.msra.gmra.mxu0 %vm270_vm2, %v1222_v33 }
0x14e8   :  { %v1292_v45 = vpop.f32.mrf.mxu0 }
0x14e9   :  { %v1326_v47 = vadd.f32 %v1325_v46, %v1292_v45 }
0x14ea   :  { %v1294_v24 = vpop.f32.mrf.mxu0 }
0x14eb   :  { %v1925_v48 = vmul.f32 -1.442695, %v1326_v47  ;;  %v1297_v49 = vadd.f32 %v2407_v39, %v1294_v24  ;;  %v73_v47 = vld [vmem:[#allocation6 + $0x30] sm:$0xff]  ;;  %v72_v24 = vld [vmem:[#allocation6 + $0x28] sm:$0xff] }
0x14ec   :  { %1950 = vmatprep.subr.mxu0 %v73_v47 }
0x14ed   :  { %2056 = vpow2.f32 %v1925_v48  ;;  %v1923_v44 = vmul.f32 -1.442695, %v1297_v49  ;;  %1951 = vmatpush3.msra.mxu0 %v73_v47  ;;  %v71_v48 = vld [vmem:[#allocation6 + $0x20] sm:$0xff] }
0x14ee   :  { %1952 = vmatprep.subr.mxu0 %v72_v24 }
0x14ef   :  { %2058 = vpow2.f32 %v1923_v44  ;;  %1953 = vmatpush3.msra.mxu0 %v72_v24 }
0x14f0   :  { %1954 = vmatprep.subr.mxu0 %v71_v48 }
0x14f1   :  { %1955 = vmatpush3.msra.mxu0 %v71_v48 }
0x14f2   :  { %1956 = vmatprep.subr.mxu0 %v70_v14 }
0x14f3   :  { %1957 = vmatpush3.msra.mxu0 %v70_v14 }
0x14fa   :  { %v2057_v23 = vpop.eup %2056 }
0x14fb   :  { %v1330_v30 = vadd.f32 1.0, %v2057_v23 }
0x14fc   :  { %v2059_v40 = vpop.eup %2058 }
0x14fd   :  { %2060 = vrcp.f32 %v1330_v30  ;;  %v1301_v0 = vadd.f32 1.0, %v2059_v40 }
0x14ff   :  { %2062 = vrcp.f32 %v1301_v0 }
0x150a   :  { %v2061_v50 = vpop.eup %2060 }
0x150b   :  { %v1333_v51 = vmul.f32 2.0, %v2061_v50 }
0x150c   :  { %v2063_v7 = vpop.eup %2062 }
0x150d   :  { %v1926_v8 = vadd.f32 -1.0, %v1333_v51  ;;  %v1304_v9 = vmul.f32 2.0, %v2063_v7 }
0x150f   :  { %v1335_v10 = vsel %vm2377_vm5, %v1926_v8, %v2061_v50  ;;  %v1924_v11 = vadd.f32 -1.0, %v1304_v9 }
0x1510   :  { %1338 = vrot.lane.b32.xlu0 %v1335_v10, %s2209_s1  ;;  %v1336_v17 = vmul.f32 %v1335_v10, %v1207_v5 }
0x1511   :  { %v1306_v39 = vsel %vm2377_vm5, %v1924_v11, %v2063_v7 }
0x1512   :  { %1309 = vrot.lane.b32.xlu1 %v1306_v39, %s2209_s1  ;;  %v1307_v20 = vmul.f32 %v1306_v39, %v1178_v2 }
0x1582   :  { %v1339_v12 = vpop.permute.xlu0 %1338 }
0x1583   :  { %v1341_v13 = vmul.f32 %v1339_v12, %v1335_v10 }
0x1584   :  { %v1310_v15 = vpop.permute.xlu1 %1309 }
0x1585   :  { %v1312_v16 = vmul.f32 %v1310_v15, %v1306_v39  ;;  %1343 = vrot.lane.b32.xlu0 %v1341_v13, %s2206_s20 }
0x1587   :  { %1314 = vrot.lane.b32.xlu1 %v1312_v16, %s2206_s20 }
0x15f7   :  { %v1344_v18 = vpop.permute.xlu0 %1343 }
0x15f8   :  { %v2691_v19 = vadd.f32 %v1344_v18, %v1336_v17 }
0x15f9   :  { %v1315_v21 = vpop.permute.xlu1 %1314 }
0x15fa   :  { %2064 = vtanh.f32 %v2691_v19  ;;  %v1317_v22 = vadd.f32 %v1315_v21, %v1307_v20 }
0x15fc   :  { %2066 = vtanh.f32 %v1317_v22 }
0x1607   :  { %v2065_v35 = vpop.eup %2064 }
0x1608   :  { %1349 = vrot.lane.b32.xlu0 %v2065_v35, %s2209_s1 }
0x1609   :  { %v2067_v37 = vpop.eup %2066 }
0x160a   :  { %1320 = vrot.lane.b32.xlu1 %v2067_v37, %s2209_s1 }
0x167a   :  { %v1350_v52 = vpop.permute.xlu0 %1349 }
0x167b   :  { %v1352_v53 = vmul.f32 %v1350_v52, %v1335_v10 }
0x167c   :  { %v1321_v54 = vpop.permute.xlu1 %1320 }
0x167d   :  { %v1323_v55 = vmul.f32 %v1321_v54, %v1306_v39  ;;  %1354 = vrot.lane.b32.xlu1 %v1352_v53, %s2206_s20 }
0x167f   :  { %v1621_v56 = vrot.slane %v1323_v55, %v2431_v31  ;;  %1358 = vrot.lane.b32.xlu0 %v1323_v55, %s2209_s1 }
0x1681   :  { %v1622_v57 = vcombine.high %v1621_v56, %v1621_v56  ;;  %v1629_v58 = vrot.slane %v1621_v56, %v2431_v31 }
0x1683   :  { %v1636_v59 = vrot.slane %v1622_v57, %v2431_v31  ;;  %v1712_v61 = vrot.slane %v1629_v58, %v2485_v6 }
0x1685   :  { %v1745_v5 = vsel %vm1744_vm11, %v1742_v28, %v1712_v61  ;;  %v1716_v63 = vrot.slane %v1636_v59, %v2485_v6 }
0x1687   :  { %v1746_v1 = vsel %vm1744_vm11, %v2678_v29, %v1716_v63 }
0x16ef   :  { %v1355_v2 = vpop.permute.xlu1 %1354 }
0x16f0   :  { %1463 = vst.msk [vmem:[#allocation9] sm:$0x3] %vm1462_vm12, %v1355_v2 }
0x16f1   :  { %v1359_v4 = vpop.permute.xlu0 %1358 }
0x16f2   :  { %v1361_v25 = vsel %vm268_vm1, %v1355_v2, %v1359_v4 }
0x16f3   :  { %1927 = vmatmul.mubr.msk.f32.vlgmr.msra.gmra.mxu1 %vm270_vm2, %v1361_v25 }
0x17b3   :  { %v1431_v27 = vpop.f32.mrf.mxu1 }
0x17b5   :  { %v1432_v26 = vpop.f32.mrf.mxu1 }
0x17b6   :  { %v1435_v3 = vadd.f32 %v2089_v32, %v1432_v26 }
0x17b8   :  { %v1928_v60 = vmul.f32 -1.442695, %v1435_v3 }
0x17ba   :  { %2068 = vpow2.f32 %v1928_v60 }
0x17c7   :  { %v2069_v62 = vpop.eup %2068 }
0x17c8   :  { %v1439_v34 = vadd.f32 1.0, %v2069_v62 }
0x17ca   :  { %2070 = vrcp.f32 %v1439_v34 }
0x17d7   :  { %v2071_v36 = vpop.eup %2070 }
0x17d8   :  { %v1442_v38 = vmul.f32 2.0, %v2071_v36 }
0x17da   :  { %v1929_v41 = vadd.f32 -1.0, %v1442_v38 }
0x17dc   :  { %v1444_v28 = vsel %vm2377_vm5, %v1929_v41, %v2071_v36 }
0x17dd   :  { %1447 = vrot.lane.b32.xlu1 %v1444_v28, %s2209_s1  ;;  %v1445_v43 = vmul.f32 %v1444_v28, %v1317_v22 }
0x184f   :  { %v1448_v29 = vpop.permute.xlu1 %1447 }
0x1850   :  { %v1450_v42 = vmul.f32 %v1448_v29, %v1444_v28 }
0x1852   :  { %1452 = vrot.lane.b32.xlu0 %v1450_v42, %s2206_s20 }
0x18c4   :  { %v1453_v33 = vpop.permute.xlu0 %1452 }
0x18c5   :  { %v1455_v45 = vadd.f32 %v1453_v33, %v1445_v43 }
0x18c7   :  { %2072 = vtanh.f32 %v1455_v45 }
0x18d4   :  { %v2073_v46 = vpop.eup %2072 }
0x18d5   :  { %1458 = vrot.lane.b32.xlu1 %v2073_v46, %s2209_s1 }
0x1947   :  { %v1459_v49 = vpop.permute.xlu1 %1458 }
0x1948   :  { %v1461_v44 = vmul.f32 %v1459_v49, %v1444_v28 }
0x194a   :  { %v1643_v23 = vrot.slane %v1461_v44, %v2431_v31 }
0x194c   :  { %v1644_v30 = vcombine.high %v1643_v23, %v1643_v23  ;;  %v1651_v40 = vrot.slane %v1643_v23, %v2431_v31 }
0x194e   :  { %v1658_v0 = vrot.slane %v1644_v30, %v2431_v31  ;;  %v1722_v50 = vrot.slane %v1651_v40, %v2485_v6 }
0x1950   :  { %v1748_v51 = vsel %vm1747_vm13, %v1745_v5, %v1722_v50  ;;  %v1726_v7 = vrot.slane %v1658_v0, %v2485_v6 }
0x1951   :  { %1756 = vrot.lane.b32.xlu0 %v1748_v51, %s2206_s20 }
0x1952   :  { %v1749_v8 = vsel %vm1747_vm13, %v1746_v1, %v1726_v7 }
0x1953   :  { %1758 = vrot.lane.b32.xlu1 %v1749_v8, %s2206_s20 }
0x1955   :  { %1465 = vrot.lane.b32.xlu0 %v1461_v44, %s2206_s20 }
0x1957   :  { %1471 = vrot.lane.b32.xlu1 %v2691_v19, %s2211_s2 }
0x1959   :  { %1476 = vrot.lane.b32.xlu0 %v1455_v45, %s2211_s2 }
0x19c3   :  { %v1757_v9 = vpop.permute.xlu0 %1756 }
0x19c4   :  { %1958 = vmatprep.mubr.msk.f32.mxu0 %vm268_vm1, %v1757_v9 }
0x19c5   :  { %v1759_v31 = vpop.permute.xlu1 %1758 }
0x19c6   :  { %1959 = vmatmul.mubr.msk.f32.vlgmr.msra.gmra.mxu0 %vm268_vm1, %v1759_v31 }
0x19c7   :  { %v1466_v10 = vpop.permute.xlu0 %1465 }
0x19c8   :  { %1469 = vst.msk [vmem:[#allocation9 + $0x2] sm:$0x3] %vm1462_vm12, %v1466_v10 }
0x19c9   :  { %v1472_v6 = vpop.permute.xlu1 %1471 }
0x19ca   :  { %1474 = vst.msk [vmem:[#allocation10] sm:$0x3] %vm1462_vm12, %v1472_v6 }
0x19cb   :  { %v1477_v11 = vpop.permute.xlu0 %1476 }
0x19cc   :  { %1480 = vst.msk [vmem:[#allocation10 + $0x2] sm:$0x3] %vm1462_vm12, %v1477_v11 }
0x19cd   :  { %2161 = shalt.err (!%p2158_p5)
}
0x19ce   :  { %s2214_s8 = smov 2   ;;  %s2170_s11 = scalar_lea.vmem %s1861_s29, 64 }
0x19cf   :  { %1854 = dma.vmem_to_hbm [thread:$0]  %s1849_s27, 64, %s2748_s6, [#allocation5], %s2206_s20, %s2206_s20, %s2214_s8  }
0x19d0   :  { %p2171_p6 = scmp.ne.s32.totalorder %s1861_s29, %s2170_s11  ;;  %p2175_p7 = scmp.lt.s32.totalorder %s1861_s29, %s1861_s29 }
0x19d1   :  { %p2176_p8 = scmp.lt.s32.totalorder %s2170_s11, %s2170_s11 }
0x19d3   :  { %p2177_p9 = por %p2176_p8, %p2175_p7 }
0x19d5   :  { %p2178_p10 = pnand %p2177_p9, %p2171_p6 }
0x19d7   :  { %2181 = shalt.err (!%p2178_p10)
}
0x19d8   :  { %1866 = dma.vmem_to_hbm [thread:$0]  %s1861_s29, 64, %s2749_s7, [#allocation11], %s2206_s20, %s2206_s20, %s2214_s8   ;;  %v1930_v39 = vld [vmem:[#allocation6 + $0x38] ss:$0 sm:$0xff] }
0x1a86   :  { %v1960_v12 = vpop.f32.mrf.mxu0 }
0x1a87   :  { %v1836_v13 = vadd.f32 %v1960_v12, %v1930_v39 }
0x1a88   :  { %v1830_v15 = vpop.f32.mrf.mxu0 }
0x1a89   :  { %1840 = vst [vmem:[%s2747_s5 + $0x8] sm:$0xff] %v1836_v13  ;;  %v1831_v16 = vadd.f32 %v1930_v39, %v1830_v15 }
0x1a8b   :  { %1839 = vst [vmem:[%s2747_s5] sm:$0xff] %v1831_v16 }
0x1a8c   :  { %2194 = dma.done.wait [#allocation5], 64  }
0x1a8d   :  { %2195 = vsyncadd [#allocation5], 4294967232 }
0x1a8e   :  { %2196 = dma.done.wait [#allocation11], 64  }
0x1a8f   :  { %2197 = vsyncadd [#allocation11], 4294967232 }
0x1a90   :  { %1875 = vsyncpa [#allocation4], 1 }
0x1a91   :  { %1876 = vsyncpa [#allocation7], 1 }
0x1a92   :  { %1877 = vsyncpa [#allocation5], 1 }
0x1a93   :  { %1878 = vsyncpa [#allocation11], 1 }

</bundles_post_ra>
